<compile_context>
chip_gen: v6e
topology: v6e:2x2x1
jax: 0.10.0
libtpu: 0.0.40
codegen_flags: <defaults>
</compile_context>

<pallas_src>
import jax
import jax.numpy as jnp
import numpy as np
from jax.experimental import pallas as pl
from jax.experimental import pallas as _pl_unused  # noqa: F401
from jax.experimental.pallas import tpu as pltpu   # noqa: F401  (kept for API parity)

# ---- problem configuration (module defaults, small) ------------------------
BATCH    = 2
SEQ_LEN  = 8
FEATURES = 11     # features=11 (module default)
HIDDEN   = 64     # embedding_size=64 (module default)
PRED_LEN = 3      # pred_len=3 (module default)
SUB      = 8      # batch rows padded to one full sublane group
# num_layers = 1, bidirectional = False


def _sigmoid(v):
    # tanh form: one EUP push + one FMA, no dependent divide, no inf for |v|>>0
    return 0.5 * jnp.tanh(0.5 * v) + 0.5


def seq2seq_kernel(x_ref, wih_e_ref, bie_ref, whh_e_ref, bhn_e_ref,
                   wih_d_ref, bid_ref, whh_d_ref, bhn_d_ref,
                   wfc_ref, bfc_ref, out_ref):
    """Single invocation, whole problem resident in VMEM (no grid, no scratch).

    x_ref    : (T*8, F)  time-major input, batch padded to 8 rows
               (row t*8 + b == x[b, t, :], rows b>=B are zero)
    wih_e_ref: (F, 3H)   encoder GRU input weights (transposed, gate order r|z|n)
    bie_ref  : (1, 3H)   b_ir+b_hr | b_iz+b_hz | b_in   (hh biases pre-folded)
    whh_e_ref: (H, 3H)   encoder GRU hidden weights (transposed)
    bhn_e_ref: (1, H)    encoder b_hn (applied inside r * (...))
    wih_d_ref: (1, 3H)   decoder GRU input weights (input size 1)
    bid_ref  : (1, 3H)   decoder folded input-side bias (as above)
    whh_d_ref: (H, 3H)   decoder GRU hidden weights (transposed)
    bhn_d_ref: (1, H)    decoder b_hn
    wfc_ref  : (1, H)    final Linear(H, 1) weight (as a row)
    bfc_ref  : (1, 1)
    out_ref  : (8, pred_len)   rows >= B are padding, sliced off outside
    """
    S = out_ref.shape[0]                 # 8 (padded batch rows)
    P = out_ref.shape[1]
    H = whh_e_ref.shape[0]
    T = x_ref.shape[0] // S

    # ---- encoder: all input projections hoisted into one MXU push ----------
    gi_all = jnp.dot(x_ref[...], wih_e_ref[...],
                     preferred_element_type=jnp.float32) + bie_ref[...]

    whh_e = whh_e_ref[...]
    bhn_e = bhn_e_ref[...]
    h = jnp.zeros((S, H), jnp.float32)                              # h_0 = 0
    for t in range(T):                                              # static unroll
        gi = gi_all[t * S:(t + 1) * S, :]          # aligned 8-sublane slice
        gh = jnp.dot(h, whh_e, preferred_element_type=jnp.float32)
        r = _sigmoid(gi[:, 0:H] + gh[:, 0:H])
        z = _sigmoid(gi[:, H:2 * H] + gh[:, H:2 * H])
        n = jnp.tanh(gi[:, 2 * H:3 * H] + r * (gh[:, 2 * H:3 * H] + bhn_e))
        h = (1.0 - z) * n + z * h

    # ---- decoder: pred_len autoregressive single-step GRU cells ------------
    wih_d = wih_d_ref[...]                                          # (1, 3H)
    bid = bid_ref[...]
    whh_d = whh_d_ref[...]
    bhn_d = bhn_d_ref[...]
    wfc = wfc_ref[...]                                              # (1, H)
    bfc = bfc_ref[...]                                              # (1, 1)

    # dec_input = x[:, -1, 0]  -> last-time rows, feature column 0
    dec_in = x_ref[pl.ds((T - 1) * S, S), pl.ds(0, 1)]              # (8, 1)

    outs = []
    for _ in range(P):                                              # static unroll
        gi = dec_in * wih_d + bid                   # (8,1)*(1,3H): VPU outer product
        gh = jnp.dot(h, whh_d, preferred_element_type=jnp.float32)
        r = _sigmoid(gi[:, 0:H] + gh[:, 0:H])
        z = _sigmoid(gi[:, H:2 * H] + gh[:, H:2 * H])
        n = jnp.tanh(gi[:, 2 * H:3 * H] + r * (gh[:, 2 * H:3 * H] + bhn_d))
        h = (1.0 - z) * n + z * h
        out_i = jnp.sum(h * wfc, axis=-1, keepdims=True) + bfc      # fc -> (8, 1)
        outs.append(out_i)
        dec_in = out_i                                              # feedback

    out_ref[...] = jnp.concatenate(outs, axis=1)                    # single store


def _fold_bias(bih, bhh, H):
    """Fold b_hr, b_hz into the input-side bias; keep b_hn separate (PyTorch
    GRU applies it inside r * (W_hn h + b_hn))."""
    bias = jnp.concatenate([bih[0:H] + bhh[0:H],
                            bih[H:2 * H] + bhh[H:2 * H],
                            bih[2 * H:3 * H]], axis=0)
    return bias[None, :], bhh[2 * H:3 * H][None, :]


def seq2seq_pallas(x, params):
    """x: (B, T, F) float32 (batch_first, like PyTorch). Returns (B, pred_len)."""
    (wih_e, whh_e, bih_e, bhh_e,
     wih_d, whh_d, bih_d, bhh_d, wfc, bfc) = params
    b, t, f = x.shape
    hd = whh_e.shape[1]

    # kernel-layout glue (plain JAX, outside the kernel):
    # time-major rows, batch padded to 8 sublanes with zero rows
    x_tb = jnp.transpose(x, (1, 0, 2))                      # (T, B, F)
    x_tb = jnp.pad(x_tb, ((0, 0), (0, SUB - b), (0, 0)))    # (T, 8, F)
    x_tb = x_tb.reshape(t * SUB, f)

    bie, bhn_e = _fold_bias(bih_e, bhh_e, hd)
    bid, bhn_d = _fold_bias(bih_d, bhh_d, hd)

    out = pl.pallas_call(
        seq2seq_kernel,
        out_shape=jax.ShapeDtypeStruct((SUB, PRED_LEN), jnp.float32),
        # no grid: one step, full arrays resident in VMEM (~120 KB total)
    )(x_tb,
      wih_e.T, bie, whh_e.T, bhn_e,
      wih_d.T, bid, whh_d.T, bhn_d,
      wfc, bfc[None, :])
    return out[:b]                                           # drop padded rows


# ---------------------------------------------------------------------------
# Pure-JAX reference (mirrors torch.nn.GRU cell equations, gate order r|z|n)
def _gru_cell_ref(x_t, h, wih, whh, bih, bhh):
    hd = h.shape[-1]
    hp = jax.lax.Precision.HIGHEST
    gi = jnp.dot(x_t, wih.T, precision=hp) + bih
    gh = jnp.dot(h, whh.T, precision=hp) + bhh
    r = jax.nn.sigmoid(gi[:, 0:hd] + gh[:, 0:hd])
    z = jax.nn.sigmoid(gi[:, hd:2 * hd] + gh[:, hd:2 * hd])
    n = jnp.tanh(gi[:, 2 * hd:] + r * gh[:, 2 * hd:])
    return (1.0 - z) * n + z * h


def seq2seq_ref(x, params):
    (wih_e, whh_e, bih_e, bhh_e,
     wih_d, whh_d, bih_d, bhh_d, wfc, bfc) = params
    b, t, _ = x.shape
    hd = whh_e.shape[1]
    hp = jax.lax.Precision.HIGHEST
    h = jnp.zeros((b, hd), jnp.float32)
    for i in range(t):
        h = _gru_cell_ref(x[:, i, :], h, wih_e, whh_e, bih_e, bhh_e)
    dec_in = x[:, -1, 0:1]                              # (B, 1)
    outs = []
    for _ in range(PRED_LEN):
        h = _gru_cell_ref(dec_in, h, wih_d, whh_d, bih_d, bhh_d)
        o = jnp.dot(h, wfc.T, precision=hp) + bfc       # (B, 1)
        outs.append(o)
        dec_in = o
    return jnp.concatenate(outs, axis=1)


if __name__ == "__main__":
    key = jax.random.PRNGKey(0)
    keys = jax.random.split(key, 11)
    H3 = 3 * HIDDEN
    s = 0.15

    # Deterministic inputs / parameters (same shapes as the PyTorch module).
    x = jax.random.normal(keys[0], (BATCH, SEQ_LEN, FEATURES), jnp.float32)

    wih_e = jax.random.normal(keys[1], (H3, FEATURES), jnp.float32) * s
    whh_e = jax.random.normal(keys[2], (H3, HIDDEN), jnp.float32) * s
    bih_e = jax.random.normal(keys[3], (H3,), jnp.float32) * s
    bhh_e = jax.random.normal(keys[4], (H3,), jnp.float32) * s

    wih_d = jax.random.normal(keys[5], (H3, 1), jnp.float32) * s
    whh_d = jax.random.normal(keys[6], (H3, HIDDEN), jnp.float32) * s
    bih_d = jax.random.normal(keys[7], (H3,), jnp.float32) * s
    bhh_d = jax.random.normal(keys[8], (H3,), jnp.float32) * s

    wfc = jax.random.normal(keys[9], (1, HIDDEN), jnp.float32) * s
    bfc = jax.random.normal(keys[10], (1,), jnp.float32) * s

    params = (wih_e, whh_e, bih_e, bhh_e,
              wih_d, whh_d, bih_d, bhh_d, wfc, bfc)

    out = seq2seq_pallas(x, params)
    jax.block_until_ready(out)

    ref = seq2seq_ref(x, params)
    np.testing.assert_allclose(np.asarray(out), np.asarray(ref),
                               rtol=1e-4, atol=1e-5)
    print("KERNEL_OK")
</pallas_src>

<mosaic_0001>
module attributes {stable_mosaic.version = 11 : i64} {
  func.func @seq2seq_kernel(%arg0: memref<64x11xf32, #tpu.memory_space<vmem>>, %arg1: memref<11x192xf32, #tpu.memory_space<vmem>>, %arg2: memref<1x192xf32, #tpu.memory_space<vmem>>, %arg3: memref<64x192xf32, #tpu.memory_space<vmem>>, %arg4: memref<1x64xf32, #tpu.memory_space<vmem>>, %arg5: memref<1x192xf32, #tpu.memory_space<vmem>>, %arg6: memref<1x192xf32, #tpu.memory_space<vmem>>, %arg7: memref<64x192xf32, #tpu.memory_space<vmem>>, %arg8: memref<1x64xf32, #tpu.memory_space<vmem>>, %arg9: memref<1x64xf32, #tpu.memory_space<vmem>>, %arg10: memref<1x1xf32, #tpu.memory_space<vmem>>, %arg11: memref<8x3xf32, #tpu.memory_space<vmem>>) attributes {dimension_semantics = [], scalar_prefetch = 0 : i64, scratch_operands = 0 : i64, tpu.core_type = #tpu.core_type<tc>} {
    %c0 = arith.constant 0 : index
    %c0_0 = arith.constant 0 : index
    %0 = vector.load %arg0[%c0, %c0_0] : memref<64x11xf32, #tpu.memory_space<vmem>>, vector<64x11xf32>
    %c0_1 = arith.constant 0 : index
    %c0_2 = arith.constant 0 : index
    %1 = vector.load %arg1[%c0_1, %c0_2] : memref<11x192xf32, #tpu.memory_space<vmem>>, vector<11x192xf32>
    %cst = arith.constant dense<0.000000e+00> : vector<64x192xf32>
    %2 = tpu.matmul %0, %1, %cst {dimension_numbers = #tpu.dot_dimension_numbers<[1], [0], [0], [1], [0, 0, 1, 1], [], []>} : vector<64x11xf32>, vector<11x192xf32>, vector<64x192xf32> -> vector<64x192xf32>
    %c0_3 = arith.constant 0 : index
    %c0_4 = arith.constant 0 : index
    %3 = vector.load %arg2[%c0_3, %c0_4] : memref<1x192xf32, #tpu.memory_space<vmem>>, vector<1x192xf32>
    %4 = vector.broadcast %3 : vector<1x192xf32> to vector<64x192xf32>
    %5 = arith.addf %2, %4 : vector<64x192xf32>
    %c0_5 = arith.constant 0 : index
    %c0_6 = arith.constant 0 : index
    %6 = vector.load %arg3[%c0_5, %c0_6] : memref<64x192xf32, #tpu.memory_space<vmem>>, vector<64x192xf32>
    %c0_7 = arith.constant 0 : index
    %c0_8 = arith.constant 0 : index
    %7 = vector.load %arg4[%c0_7, %c0_8] : memref<1x64xf32, #tpu.memory_space<vmem>>, vector<1x64xf32>
    %cst_9 = arith.constant 0.000000e+00 : f32
    %8 = vector.broadcast %cst_9 : f32 to vector<8x64xf32>
    %9 = vector.extract_strided_slice %5 {offsets = [0, 0], sizes = [8, 192], strides = [1, 1]} : vector<64x192xf32> to vector<8x192xf32>
    %cst_10 = arith.constant dense<0.000000e+00> : vector<8x192xf32>
    %10 = tpu.matmul %8, %6, %cst_10 {dimension_numbers = #tpu.dot_dimension_numbers<[1], [0], [0], [1], [0, 0, 1, 1], [], []>} : vector<8x64xf32>, vector<64x192xf32>, vector<8x192xf32> -> vector<8x192xf32>
    %11 = vector.extract_strided_slice %9 {offsets = [0, 0], sizes = [8, 64], strides = [1, 1]} : vector<8x192xf32> to vector<8x64xf32>
    %12 = vector.extract_strided_slice %10 {offsets = [0, 0], sizes = [8, 64], strides = [1, 1]} : vector<8x192xf32> to vector<8x64xf32>
    %13 = arith.addf %11, %12 : vector<8x64xf32>
    %cst_11 = arith.constant 5.000000e-01 : f32
    %14 = vector.broadcast %cst_11 : f32 to vector<8x64xf32>
    %15 = arith.mulf %14, %13 : vector<8x64xf32>
    %16 = math.tanh %15 : vector<8x64xf32>
    %cst_12 = arith.constant 5.000000e-01 : f32
    %17 = vector.broadcast %cst_12 : f32 to vector<8x64xf32>
    %18 = arith.mulf %17, %16 : vector<8x64xf32>
    %cst_13 = arith.constant 5.000000e-01 : f32
    %19 = vector.broadcast %cst_13 : f32 to vector<8x64xf32>
    %20 = arith.addf %18, %19 : vector<8x64xf32>
    %21 = vector.extract_strided_slice %9 {offsets = [0, 64], sizes = [8, 64], strides = [1, 1]} : vector<8x192xf32> to vector<8x64xf32>
    %22 = vector.extract_strided_slice %10 {offsets = [0, 64], sizes = [8, 64], strides = [1, 1]} : vector<8x192xf32> to vector<8x64xf32>
    %23 = arith.addf %21, %22 : vector<8x64xf32>
    %cst_14 = arith.constant 5.000000e-01 : f32
    %24 = vector.broadcast %cst_14 : f32 to vector<8x64xf32>
    %25 = arith.mulf %24, %23 : vector<8x64xf32>
    %26 = math.tanh %25 : vector<8x64xf32>
    %cst_15 = arith.constant 5.000000e-01 : f32
    %27 = vector.broadcast %cst_15 : f32 to vector<8x64xf32>
    %28 = arith.mulf %27, %26 : vector<8x64xf32>
    %cst_16 = arith.constant 5.000000e-01 : f32
    %29 = vector.broadcast %cst_16 : f32 to vector<8x64xf32>
    %30 = arith.addf %28, %29 : vector<8x64xf32>
    %31 = vector.extract_strided_slice %9 {offsets = [0, 128], sizes = [8, 64], strides = [1, 1]} : vector<8x192xf32> to vector<8x64xf32>
    %32 = vector.extract_strided_slice %10 {offsets = [0, 128], sizes = [8, 64], strides = [1, 1]} : vector<8x192xf32> to vector<8x64xf32>
    %33 = vector.broadcast %7 : vector<1x64xf32> to vector<8x64xf32>
    %34 = arith.addf %32, %33 : vector<8x64xf32>
    %35 = arith.mulf %20, %34 : vector<8x64xf32>
    %36 = arith.addf %31, %35 : vector<8x64xf32>
    %37 = math.tanh %36 : vector<8x64xf32>
    %cst_17 = arith.constant 1.000000e+00 : f32
    %38 = vector.broadcast %cst_17 : f32 to vector<8x64xf32>
    %39 = arith.subf %38, %30 : vector<8x64xf32>
    %40 = arith.mulf %39, %37 : vector<8x64xf32>
    %41 = arith.mulf %30, %8 : vector<8x64xf32>
    %42 = arith.addf %40, %41 : vector<8x64xf32>
    %43 = vector.extract_strided_slice %5 {offsets = [8, 0], sizes = [8, 192], strides = [1, 1]} : vector<64x192xf32> to vector<8x192xf32>
    %cst_18 = arith.constant dense<0.000000e+00> : vector<8x192xf32>
    %44 = tpu.matmul %42, %6, %cst_18 {dimension_numbers = #tpu.dot_dimension_numbers<[1], [0], [0], [1], [0, 0, 1, 1], [], []>} : vector<8x64xf32>, vector<64x192xf32>, vector<8x192xf32> -> vector<8x192xf32>
    %45 = vector.extract_strided_slice %43 {offsets = [0, 0], sizes = [8, 64], strides = [1, 1]} : vector<8x192xf32> to vector<8x64xf32>
    %46 = vector.extract_strided_slice %44 {offsets = [0, 0], sizes = [8, 64], strides = [1, 1]} : vector<8x192xf32> to vector<8x64xf32>
    %47 = arith.addf %45, %46 : vector<8x64xf32>
    %cst_19 = arith.constant 5.000000e-01 : f32
    %48 = vector.broadcast %cst_19 : f32 to vector<8x64xf32>
    %49 = arith.mulf %48, %47 : vector<8x64xf32>
    %50 = math.tanh %49 : vector<8x64xf32>
    %cst_20 = arith.constant 5.000000e-01 : f32
    %51 = vector.broadcast %cst_20 : f32 to vector<8x64xf32>
    %52 = arith.mulf %51, %50 : vector<8x64xf32>
    %cst_21 = arith.constant 5.000000e-01 : f32
    %53 = vector.broadcast %cst_21 : f32 to vector<8x64xf32>
    %54 = arith.addf %52, %53 : vector<8x64xf32>
    %55 = vector.extract_strided_slice %43 {offsets = [0, 64], sizes = [8, 64], strides = [1, 1]} : vector<8x192xf32> to vector<8x64xf32>
    %56 = vector.extract_strided_slice %44 {offsets = [0, 64], sizes = [8, 64], strides = [1, 1]} : vector<8x192xf32> to vector<8x64xf32>
    %57 = arith.addf %55, %56 : vector<8x64xf32>
    %cst_22 = arith.constant 5.000000e-01 : f32
    %58 = vector.broadcast %cst_22 : f32 to vector<8x64xf32>
    %59 = arith.mulf %58, %57 : vector<8x64xf32>
    %60 = math.tanh %59 : vector<8x64xf32>
    %cst_23 = arith.constant 5.000000e-01 : f32
    %61 = vector.broadcast %cst_23 : f32 to vector<8x64xf32>
    %62 = arith.mulf %61, %60 : vector<8x64xf32>
    %cst_24 = arith.constant 5.000000e-01 : f32
    %63 = vector.broadcast %cst_24 : f32 to vector<8x64xf32>
    %64 = arith.addf %62, %63 : vector<8x64xf32>
    %65 = vector.extract_strided_slice %43 {offsets = [0, 128], sizes = [8, 64], strides = [1, 1]} : vector<8x192xf32> to vector<8x64xf32>
    %66 = vector.extract_strided_slice %44 {offsets = [0, 128], sizes = [8, 64], strides = [1, 1]} : vector<8x192xf32> to vector<8x64xf32>
    %67 = vector.broadcast %7 : vector<1x64xf32> to vector<8x64xf32>
    %68 = arith.addf %66, %67 : vector<8x64xf32>
    %69 = arith.mulf %54, %68 : vector<8x64xf32>
    %70 = arith.addf %65, %69 : vector<8x64xf32>
    %71 = math.tanh %70 : vector<8x64xf32>
    %cst_25 = arith.constant 1.000000e+00 : f32
    %72 = vector.broadcast %cst_25 : f32 to vector<8x64xf32>
    %73 = arith.subf %72, %64 : vector<8x64xf32>
    %74 = arith.mulf %73, %71 : vector<8x64xf32>
    %75 = arith.mulf %64, %42 : vector<8x64xf32>
    %76 = arith.addf %74, %75 : vector<8x64xf32>
    %77 = vector.extract_strided_slice %5 {offsets = [16, 0], sizes = [8, 192], strides = [1, 1]} : vector<64x192xf32> to vector<8x192xf32>
    %cst_26 = arith.constant dense<0.000000e+00> : vector<8x192xf32>
    %78 = tpu.matmul %76, %6, %cst_26 {dimension_numbers = #tpu.dot_dimension_numbers<[1], [0], [0], [1], [0, 0, 1, 1], [], []>} : vector<8x64xf32>, vector<64x192xf32>, vector<8x192xf32> -> vector<8x192xf32>
    %79 = vector.extract_strided_slice %77 {offsets = [0, 0], sizes = [8, 64], strides = [1, 1]} : vector<8x192xf32> to vector<8x64xf32>
    %80 = vector.extract_strided_slice %78 {offsets = [0, 0], sizes = [8, 64], strides = [1, 1]} : vector<8x192xf32> to vector<8x64xf32>
    %81 = arith.addf %79, %80 : vector<8x64xf32>
    %cst_27 = arith.constant 5.000000e-01 : f32
    %82 = vector.broadcast %cst_27 : f32 to vector<8x64xf32>
    %83 = arith.mulf %82, %81 : vector<8x64xf32>
    %84 = math.tanh %83 : vector<8x64xf32>
    %cst_28 = arith.constant 5.000000e-01 : f32
    %85 = vector.broadcast %cst_28 : f32 to vector<8x64xf32>
    %86 = arith.mulf %85, %84 : vector<8x64xf32>
    %cst_29 = arith.constant 5.000000e-01 : f32
    %87 = vector.broadcast %cst_29 : f32 to vector<8x64xf32>
    %88 = arith.addf %86, %87 : vector<8x64xf32>
    %89 = vector.extract_strided_slice %77 {offsets = [0, 64], sizes = [8, 64], strides = [1, 1]} : vector<8x192xf32> to vector<8x64xf32>
    %90 = vector.extract_strided_slice %78 {offsets = [0, 64], sizes = [8, 64], strides = [1, 1]} : vector<8x192xf32> to vector<8x64xf32>
    %91 = arith.addf %89, %90 : vector<8x64xf32>
    %cst_30 = arith.constant 5.000000e-01 : f32
    %92 = vector.broadcast %cst_30 : f32 to vector<8x64xf32>
    %93 = arith.mulf %92, %91 : vector<8x64xf32>
    %94 = math.tanh %93 : vector<8x64xf32>
    %cst_31 = arith.constant 5.000000e-01 : f32
    %95 = vector.broadcast %cst_31 : f32 to vector<8x64xf32>
    %96 = arith.mulf %95, %94 : vector<8x64xf32>
    %cst_32 = arith.constant 5.000000e-01 : f32
    %97 = vector.broadcast %cst_32 : f32 to vector<8x64xf32>
    %98 = arith.addf %96, %97 : vector<8x64xf32>
    %99 = vector.extract_strided_slice %77 {offsets = [0, 128], sizes = [8, 64], strides = [1, 1]} : vector<8x192xf32> to vector<8x64xf32>
    %100 = vector.extract_strided_slice %78 {offsets = [0, 128], sizes = [8, 64], strides = [1, 1]} : vector<8x192xf32> to vector<8x64xf32>
    %101 = vector.broadcast %7 : vector<1x64xf32> to vector<8x64xf32>
    %102 = arith.addf %100, %101 : vector<8x64xf32>
    %103 = arith.mulf %88, %102 : vector<8x64xf32>
    %104 = arith.addf %99, %103 : vector<8x64xf32>
    %105 = math.tanh %104 : vector<8x64xf32>
    %cst_33 = arith.constant 1.000000e+00 : f32
    %106 = vector.broadcast %cst_33 : f32 to vector<8x64xf32>
    %107 = arith.subf %106, %98 : vector<8x64xf32>
    %108 = arith.mulf %107, %105 : vector<8x64xf32>
    %109 = arith.mulf %98, %76 : vector<8x64xf32>
    %110 = arith.addf %108, %109 : vector<8x64xf32>
    %111 = vector.extract_strided_slice %5 {offsets = [24, 0], sizes = [8, 192], strides = [1, 1]} : vector<64x192xf32> to vector<8x192xf32>
    %cst_34 = arith.constant dense<0.000000e+00> : vector<8x192xf32>
    %112 = tpu.matmul %110, %6, %cst_34 {dimension_numbers = #tpu.dot_dimension_numbers<[1], [0], [0], [1], [0, 0, 1, 1], [], []>} : vector<8x64xf32>, vector<64x192xf32>, vector<8x192xf32> -> vector<8x192xf32>
    %113 = vector.extract_strided_slice %111 {offsets = [0, 0], sizes = [8, 64], strides = [1, 1]} : vector<8x192xf32> to vector<8x64xf32>
    %114 = vector.extract_strided_slice %112 {offsets = [0, 0], sizes = [8, 64], strides = [1, 1]} : vector<8x192xf32> to vector<8x64xf32>
    %115 = arith.addf %113, %114 : vector<8x64xf32>
    %cst_35 = arith.constant 5.000000e-01 : f32
    %116 = vector.broadcast %cst_35 : f32 to vector<8x64xf32>
    %117 = arith.mulf %116, %115 : vector<8x64xf32>
    %118 = math.tanh %117 : vector<8x64xf32>
    %cst_36 = arith.constant 5.000000e-01 : f32
    %119 = vector.broadcast %cst_36 : f32 to vector<8x64xf32>
    %120 = arith.mulf %119, %118 : vector<8x64xf32>
    %cst_37 = arith.constant 5.000000e-01 : f32
    %121 = vector.broadcast %cst_37 : f32 to vector<8x64xf32>
    %122 = arith.addf %120, %121 : vector<8x64xf32>
    %123 = vector.extract_strided_slice %111 {offsets = [0, 64], sizes = [8, 64], strides = [1, 1]} : vector<8x192xf32> to vector<8x64xf32>
    %124 = vector.extract_strided_slice %112 {offsets = [0, 64], sizes = [8, 64], strides = [1, 1]} : vector<8x192xf32> to vector<8x64xf32>
    %125 = arith.addf %123, %124 : vector<8x64xf32>
    %cst_38 = arith.constant 5.000000e-01 : f32
    %126 = vector.broadcast %cst_38 : f32 to vector<8x64xf32>
    %127 = arith.mulf %126, %125 : vector<8x64xf32>
    %128 = math.tanh %127 : vector<8x64xf32>
    %cst_39 = arith.constant 5.000000e-01 : f32
    %129 = vector.broadcast %cst_39 : f32 to vector<8x64xf32>
    %130 = arith.mulf %129, %128 : vector<8x64xf32>
    %cst_40 = arith.constant 5.000000e-01 : f32
    %131 = vector.broadcast %cst_40 : f32 to vector<8x64xf32>
    %132 = arith.addf %130, %131 : vector<8x64xf32>
    %133 = vector.extract_strided_slice %111 {offsets = [0, 128], sizes = [8, 64], strides = [1, 1]} : vector<8x192xf32> to vector<8x64xf32>
    %134 = vector.extract_strided_slice %112 {offsets = [0, 128], sizes = [8, 64], strides = [1, 1]} : vector<8x192xf32> to vector<8x64xf32>
    %135 = vector.broadcast %7 : vector<1x64xf32> to vector<8x64xf32>
    %136 = arith.addf %134, %135 : vector<8x64xf32>
    %137 = arith.mulf %122, %136 : vector<8x64xf32>
    %138 = arith.addf %133, %137 : vector<8x64xf32>
    %139 = math.tanh %138 : vector<8x64xf32>
    %cst_41 = arith.constant 1.000000e+00 : f32
    %140 = vector.broadcast %cst_41 : f32 to vector<8x64xf32>
    %141 = arith.subf %140, %132 : vector<8x64xf32>
    %142 = arith.mulf %141, %139 : vector<8x64xf32>
    %143 = arith.mulf %132, %110 : vector<8x64xf32>
    %144 = arith.addf %142, %143 : vector<8x64xf32>
    %145 = vector.extract_strided_slice %5 {offsets = [32, 0], sizes = [8, 192], strides = [1, 1]} : vector<64x192xf32> to vector<8x192xf32>
    %cst_42 = arith.constant dense<0.000000e+00> : vector<8x192xf32>
    %146 = tpu.matmul %144, %6, %cst_42 {dimension_numbers = #tpu.dot_dimension_numbers<[1], [0], [0], [1], [0, 0, 1, 1], [], []>} : vector<8x64xf32>, vector<64x192xf32>, vector<8x192xf32> -> vector<8x192xf32>
    %147 = vector.extract_strided_slice %145 {offsets = [0, 0], sizes = [8, 64], strides = [1, 1]} : vector<8x192xf32> to vector<8x64xf32>
    %148 = vector.extract_strided_slice %146 {offsets = [0, 0], sizes = [8, 64], strides = [1, 1]} : vector<8x192xf32> to vector<8x64xf32>
    %149 = arith.addf %147, %148 : vector<8x64xf32>
    %cst_43 = arith.constant 5.000000e-01 : f32
    %150 = vector.broadcast %cst_43 : f32 to vector<8x64xf32>
    %151 = arith.mulf %150, %149 : vector<8x64xf32>
    %152 = math.tanh %151 : vector<8x64xf32>
    %cst_44 = arith.constant 5.000000e-01 : f32
    %153 = vector.broadcast %cst_44 : f32 to vector<8x64xf32>
    %154 = arith.mulf %153, %152 : vector<8x64xf32>
    %cst_45 = arith.constant 5.000000e-01 : f32
    %155 = vector.broadcast %cst_45 : f32 to vector<8x64xf32>
    %156 = arith.addf %154, %155 : vector<8x64xf32>
    %157 = vector.extract_strided_slice %145 {offsets = [0, 64], sizes = [8, 64], strides = [1, 1]} : vector<8x192xf32> to vector<8x64xf32>
    %158 = vector.extract_strided_slice %146 {offsets = [0, 64], sizes = [8, 64], strides = [1, 1]} : vector<8x192xf32> to vector<8x64xf32>
    %159 = arith.addf %157, %158 : vector<8x64xf32>
    %cst_46 = arith.constant 5.000000e-01 : f32
    %160 = vector.broadcast %cst_46 : f32 to vector<8x64xf32>
    %161 = arith.mulf %160, %159 : vector<8x64xf32>
    %162 = math.tanh %161 : vector<8x64xf32>
    %cst_47 = arith.constant 5.000000e-01 : f32
    %163 = vector.broadcast %cst_47 : f32 to vector<8x64xf32>
    %164 = arith.mulf %163, %162 : vector<8x64xf32>
    %cst_48 = arith.constant 5.000000e-01 : f32
    %165 = vector.broadcast %cst_48 : f32 to vector<8x64xf32>
    %166 = arith.addf %164, %165 : vector<8x64xf32>
    %167 = vector.extract_strided_slice %145 {offsets = [0, 128], sizes = [8, 64], strides = [1, 1]} : vector<8x192xf32> to vector<8x64xf32>
    %168 = vector.extract_strided_slice %146 {offsets = [0, 128], sizes = [8, 64], strides = [1, 1]} : vector<8x192xf32> to vector<8x64xf32>
    %169 = vector.broadcast %7 : vector<1x64xf32> to vector<8x64xf32>
    %170 = arith.addf %168, %169 : vector<8x64xf32>
    %171 = arith.mulf %156, %170 : vector<8x64xf32>
    %172 = arith.addf %167, %171 : vector<8x64xf32>
    %173 = math.tanh %172 : vector<8x64xf32>
    %cst_49 = arith.constant 1.000000e+00 : f32
    %174 = vector.broadcast %cst_49 : f32 to vector<8x64xf32>
    %175 = arith.subf %174, %166 : vector<8x64xf32>
    %176 = arith.mulf %175, %173 : vector<8x64xf32>
    %177 = arith.mulf %166, %144 : vector<8x64xf32>
    %178 = arith.addf %176, %177 : vector<8x64xf32>
    %179 = vector.extract_strided_slice %5 {offsets = [40, 0], sizes = [8, 192], strides = [1, 1]} : vector<64x192xf32> to vector<8x192xf32>
    %cst_50 = arith.constant dense<0.000000e+00> : vector<8x192xf32>
    %180 = tpu.matmul %178, %6, %cst_50 {dimension_numbers = #tpu.dot_dimension_numbers<[1], [0], [0], [1], [0, 0, 1, 1], [], []>} : vector<8x64xf32>, vector<64x192xf32>, vector<8x192xf32> -> vector<8x192xf32>
    %181 = vector.extract_strided_slice %179 {offsets = [0, 0], sizes = [8, 64], strides = [1, 1]} : vector<8x192xf32> to vector<8x64xf32>
    %182 = vector.extract_strided_slice %180 {offsets = [0, 0], sizes = [8, 64], strides = [1, 1]} : vector<8x192xf32> to vector<8x64xf32>
    %183 = arith.addf %181, %182 : vector<8x64xf32>
    %cst_51 = arith.constant 5.000000e-01 : f32
    %184 = vector.broadcast %cst_51 : f32 to vector<8x64xf32>
    %185 = arith.mulf %184, %183 : vector<8x64xf32>
    %186 = math.tanh %185 : vector<8x64xf32>
    %cst_52 = arith.constant 5.000000e-01 : f32
    %187 = vector.broadcast %cst_52 : f32 to vector<8x64xf32>
    %188 = arith.mulf %187, %186 : vector<8x64xf32>
    %cst_53 = arith.constant 5.000000e-01 : f32
    %189 = vector.broadcast %cst_53 : f32 to vector<8x64xf32>
    %190 = arith.addf %188, %189 : vector<8x64xf32>
    %191 = vector.extract_strided_slice %179 {offsets = [0, 64], sizes = [8, 64], strides = [1, 1]} : vector<8x192xf32> to vector<8x64xf32>
    %192 = vector.extract_strided_slice %180 {offsets = [0, 64], sizes = [8, 64], strides = [1, 1]} : vector<8x192xf32> to vector<8x64xf32>
    %193 = arith.addf %191, %192 : vector<8x64xf32>
    %cst_54 = arith.constant 5.000000e-01 : f32
    %194 = vector.broadcast %cst_54 : f32 to vector<8x64xf32>
    %195 = arith.mulf %194, %193 : vector<8x64xf32>
    %196 = math.tanh %195 : vector<8x64xf32>
    %cst_55 = arith.constant 5.000000e-01 : f32
    %197 = vector.broadcast %cst_55 : f32 to vector<8x64xf32>
    %198 = arith.mulf %197, %196 : vector<8x64xf32>
    %cst_56 = arith.constant 5.000000e-01 : f32
    %199 = vector.broadcast %cst_56 : f32 to vector<8x64xf32>
    %200 = arith.addf %198, %199 : vector<8x64xf32>
    %201 = vector.extract_strided_slice %179 {offsets = [0, 128], sizes = [8, 64], strides = [1, 1]} : vector<8x192xf32> to vector<8x64xf32>
    %202 = vector.extract_strided_slice %180 {offsets = [0, 128], sizes = [8, 64], strides = [1, 1]} : vector<8x192xf32> to vector<8x64xf32>
    %203 = vector.broadcast %7 : vector<1x64xf32> to vector<8x64xf32>
    %204 = arith.addf %202, %203 : vector<8x64xf32>
    %205 = arith.mulf %190, %204 : vector<8x64xf32>
    %206 = arith.addf %201, %205 : vector<8x64xf32>
    %207 = math.tanh %206 : vector<8x64xf32>
    %cst_57 = arith.constant 1.000000e+00 : f32
    %208 = vector.broadcast %cst_57 : f32 to vector<8x64xf32>
    %209 = arith.subf %208, %200 : vector<8x64xf32>
    %210 = arith.mulf %209, %207 : vector<8x64xf32>
    %211 = arith.mulf %200, %178 : vector<8x64xf32>
    %212 = arith.addf %210, %211 : vector<8x64xf32>
    %213 = vector.extract_strided_slice %5 {offsets = [48, 0], sizes = [8, 192], strides = [1, 1]} : vector<64x192xf32> to vector<8x192xf32>
    %cst_58 = arith.constant dense<0.000000e+00> : vector<8x192xf32>
    %214 = tpu.matmul %212, %6, %cst_58 {dimension_numbers = #tpu.dot_dimension_numbers<[1], [0], [0], [1], [0, 0, 1, 1], [], []>} : vector<8x64xf32>, vector<64x192xf32>, vector<8x192xf32> -> vector<8x192xf32>
    %215 = vector.extract_strided_slice %213 {offsets = [0, 0], sizes = [8, 64], strides = [1, 1]} : vector<8x192xf32> to vector<8x64xf32>
    %216 = vector.extract_strided_slice %214 {offsets = [0, 0], sizes = [8, 64], strides = [1, 1]} : vector<8x192xf32> to vector<8x64xf32>
    %217 = arith.addf %215, %216 : vector<8x64xf32>
    %cst_59 = arith.constant 5.000000e-01 : f32
    %218 = vector.broadcast %cst_59 : f32 to vector<8x64xf32>
    %219 = arith.mulf %218, %217 : vector<8x64xf32>
    %220 = math.tanh %219 : vector<8x64xf32>
    %cst_60 = arith.constant 5.000000e-01 : f32
    %221 = vector.broadcast %cst_60 : f32 to vector<8x64xf32>
    %222 = arith.mulf %221, %220 : vector<8x64xf32>
    %cst_61 = arith.constant 5.000000e-01 : f32
    %223 = vector.broadcast %cst_61 : f32 to vector<8x64xf32>
    %224 = arith.addf %222, %223 : vector<8x64xf32>
    %225 = vector.extract_strided_slice %213 {offsets = [0, 64], sizes = [8, 64], strides = [1, 1]} : vector<8x192xf32> to vector<8x64xf32>
    %226 = vector.extract_strided_slice %214 {offsets = [0, 64], sizes = [8, 64], strides = [1, 1]} : vector<8x192xf32> to vector<8x64xf32>
    %227 = arith.addf %225, %226 : vector<8x64xf32>
    %cst_62 = arith.constant 5.000000e-01 : f32
    %228 = vector.broadcast %cst_62 : f32 to vector<8x64xf32>
    %229 = arith.mulf %228, %227 : vector<8x64xf32>
    %230 = math.tanh %229 : vector<8x64xf32>
    %cst_63 = arith.constant 5.000000e-01 : f32
    %231 = vector.broadcast %cst_63 : f32 to vector<8x64xf32>
    %232 = arith.mulf %231, %230 : vector<8x64xf32>
    %cst_64 = arith.constant 5.000000e-01 : f32
    %233 = vector.broadcast %cst_64 : f32 to vector<8x64xf32>
    %234 = arith.addf %232, %233 : vector<8x64xf32>
    %235 = vector.extract_strided_slice %213 {offsets = [0, 128], sizes = [8, 64], strides = [1, 1]} : vector<8x192xf32> to vector<8x64xf32>
    %236 = vector.extract_strided_slice %214 {offsets = [0, 128], sizes = [8, 64], strides = [1, 1]} : vector<8x192xf32> to vector<8x64xf32>
    %237 = vector.broadcast %7 : vector<1x64xf32> to vector<8x64xf32>
    %238 = arith.addf %236, %237 : vector<8x64xf32>
    %239 = arith.mulf %224, %238 : vector<8x64xf32>
    %240 = arith.addf %235, %239 : vector<8x64xf32>
    %241 = math.tanh %240 : vector<8x64xf32>
    %cst_65 = arith.constant 1.000000e+00 : f32
    %242 = vector.broadcast %cst_65 : f32 to vector<8x64xf32>
    %243 = arith.subf %242, %234 : vector<8x64xf32>
    %244 = arith.mulf %243, %241 : vector<8x64xf32>
    %245 = arith.mulf %234, %212 : vector<8x64xf32>
    %246 = arith.addf %244, %245 : vector<8x64xf32>
    %247 = vector.extract_strided_slice %5 {offsets = [56, 0], sizes = [8, 192], strides = [1, 1]} : vector<64x192xf32> to vector<8x192xf32>
    %cst_66 = arith.constant dense<0.000000e+00> : vector<8x192xf32>
    %248 = tpu.matmul %246, %6, %cst_66 {dimension_numbers = #tpu.dot_dimension_numbers<[1], [0], [0], [1], [0, 0, 1, 1], [], []>} : vector<8x64xf32>, vector<64x192xf32>, vector<8x192xf32> -> vector<8x192xf32>
    %249 = vector.extract_strided_slice %247 {offsets = [0, 0], sizes = [8, 64], strides = [1, 1]} : vector<8x192xf32> to vector<8x64xf32>
    %250 = vector.extract_strided_slice %248 {offsets = [0, 0], sizes = [8, 64], strides = [1, 1]} : vector<8x192xf32> to vector<8x64xf32>
    %251 = arith.addf %249, %250 : vector<8x64xf32>
    %cst_67 = arith.constant 5.000000e-01 : f32
    %252 = vector.broadcast %cst_67 : f32 to vector<8x64xf32>
    %253 = arith.mulf %252, %251 : vector<8x64xf32>
    %254 = math.tanh %253 : vector<8x64xf32>
    %cst_68 = arith.constant 5.000000e-01 : f32
    %255 = vector.broadcast %cst_68 : f32 to vector<8x64xf32>
    %256 = arith.mulf %255, %254 : vector<8x64xf32>
    %cst_69 = arith.constant 5.000000e-01 : f32
    %257 = vector.broadcast %cst_69 : f32 to vector<8x64xf32>
    %258 = arith.addf %256, %257 : vector<8x64xf32>
    %259 = vector.extract_strided_slice %247 {offsets = [0, 64], sizes = [8, 64], strides = [1, 1]} : vector<8x192xf32> to vector<8x64xf32>
    %260 = vector.extract_strided_slice %248 {offsets = [0, 64], sizes = [8, 64], strides = [1, 1]} : vector<8x192xf32> to vector<8x64xf32>
    %261 = arith.addf %259, %260 : vector<8x64xf32>
    %cst_70 = arith.constant 5.000000e-01 : f32
    %262 = vector.broadcast %cst_70 : f32 to vector<8x64xf32>
    %263 = arith.mulf %262, %261 : vector<8x64xf32>
    %264 = math.tanh %263 : vector<8x64xf32>
    %cst_71 = arith.constant 5.000000e-01 : f32
    %265 = vector.broadcast %cst_71 : f32 to vector<8x64xf32>
    %266 = arith.mulf %265, %264 : vector<8x64xf32>
    %cst_72 = arith.constant 5.000000e-01 : f32
    %267 = vector.broadcast %cst_72 : f32 to vector<8x64xf32>
    %268 = arith.addf %266, %267 : vector<8x64xf32>
    %269 = vector.extract_strided_slice %247 {offsets = [0, 128], sizes = [8, 64], strides = [1, 1]} : vector<8x192xf32> to vector<8x64xf32>
    %270 = vector.extract_strided_slice %248 {offsets = [0, 128], sizes = [8, 64], strides = [1, 1]} : vector<8x192xf32> to vector<8x64xf32>
    %271 = vector.broadcast %7 : vector<1x64xf32> to vector<8x64xf32>
    %272 = arith.addf %270, %271 : vector<8x64xf32>
    %273 = arith.mulf %258, %272 : vector<8x64xf32>
    %274 = arith.addf %269, %273 : vector<8x64xf32>
    %275 = math.tanh %274 : vector<8x64xf32>
    %cst_73 = arith.constant 1.000000e+00 : f32
    %276 = vector.broadcast %cst_73 : f32 to vector<8x64xf32>
    %277 = arith.subf %276, %268 : vector<8x64xf32>
    %278 = arith.mulf %277, %275 : vector<8x64xf32>
    %279 = arith.mulf %268, %246 : vector<8x64xf32>
    %280 = arith.addf %278, %279 : vector<8x64xf32>
    %c0_74 = arith.constant 0 : index
    %c0_75 = arith.constant 0 : index
    %281 = vector.load %arg5[%c0_74, %c0_75] : memref<1x192xf32, #tpu.memory_space<vmem>>, vector<1x192xf32>
    %c0_76 = arith.constant 0 : index
    %c0_77 = arith.constant 0 : index
    %282 = vector.load %arg6[%c0_76, %c0_77] : memref<1x192xf32, #tpu.memory_space<vmem>>, vector<1x192xf32>
    %c0_78 = arith.constant 0 : index
    %c0_79 = arith.constant 0 : index
    %283 = vector.load %arg7[%c0_78, %c0_79] : memref<64x192xf32, #tpu.memory_space<vmem>>, vector<64x192xf32>
    %c0_80 = arith.constant 0 : index
    %c0_81 = arith.constant 0 : index
    %284 = vector.load %arg8[%c0_80, %c0_81] : memref<1x64xf32, #tpu.memory_space<vmem>>, vector<1x64xf32>
    %c0_82 = arith.constant 0 : index
    %c0_83 = arith.constant 0 : index
    %285 = vector.load %arg9[%c0_82, %c0_83] : memref<1x64xf32, #tpu.memory_space<vmem>>, vector<1x64xf32>
    %c0_84 = arith.constant 0 : index
    %c0_85 = arith.constant 0 : index
    %286 = vector.load %arg10[%c0_84, %c0_85] : memref<1x1xf32, #tpu.memory_space<vmem>>, vector<1x1xf32>
    %c56 = arith.constant 56 : index
    %c0_86 = arith.constant 0 : index
    %287 = vector.load %arg0[%c56, %c0_86] : memref<64x11xf32, #tpu.memory_space<vmem>>, vector<8x1xf32>
    %288 = vector.broadcast %287 : vector<8x1xf32> to vector<8x192xf32>
    %289 = vector.broadcast %281 : vector<1x192xf32> to vector<8x192xf32>
    %290 = arith.mulf %288, %289 : vector<8x192xf32>
    %291 = vector.broadcast %282 : vector<1x192xf32> to vector<8x192xf32>
    %292 = arith.addf %290, %291 : vector<8x192xf32>
    %cst_87 = arith.constant dense<0.000000e+00> : vector<8x192xf32>
    %293 = tpu.matmul %280, %283, %cst_87 {dimension_numbers = #tpu.dot_dimension_numbers<[1], [0], [0], [1], [0, 0, 1, 1], [], []>} : vector<8x64xf32>, vector<64x192xf32>, vector<8x192xf32> -> vector<8x192xf32>
    %294 = vector.extract_strided_slice %292 {offsets = [0, 0], sizes = [8, 64], strides = [1, 1]} : vector<8x192xf32> to vector<8x64xf32>
    %295 = vector.extract_strided_slice %293 {offsets = [0, 0], sizes = [8, 64], strides = [1, 1]} : vector<8x192xf32> to vector<8x64xf32>
    %296 = arith.addf %294, %295 : vector<8x64xf32>
    %cst_88 = arith.constant 5.000000e-01 : f32
    %297 = vector.broadcast %cst_88 : f32 to vector<8x64xf32>
    %298 = arith.mulf %297, %296 : vector<8x64xf32>
    %299 = math.tanh %298 : vector<8x64xf32>
    %cst_89 = arith.constant 5.000000e-01 : f32
    %300 = vector.broadcast %cst_89 : f32 to vector<8x64xf32>
    %301 = arith.mulf %300, %299 : vector<8x64xf32>
    %cst_90 = arith.constant 5.000000e-01 : f32
    %302 = vector.broadcast %cst_90 : f32 to vector<8x64xf32>
    %303 = arith.addf %301, %302 : vector<8x64xf32>
    %304 = vector.extract_strided_slice %292 {offsets = [0, 64], sizes = [8, 64], strides = [1, 1]} : vector<8x192xf32> to vector<8x64xf32>
    %305 = vector.extract_strided_slice %293 {offsets = [0, 64], sizes = [8, 64], strides = [1, 1]} : vector<8x192xf32> to vector<8x64xf32>
    %306 = arith.addf %304, %305 : vector<8x64xf32>
    %cst_91 = arith.constant 5.000000e-01 : f32
    %307 = vector.broadcast %cst_91 : f32 to vector<8x64xf32>
    %308 = arith.mulf %307, %306 : vector<8x64xf32>
    %309 = math.tanh %308 : vector<8x64xf32>
    %cst_92 = arith.constant 5.000000e-01 : f32
    %310 = vector.broadcast %cst_92 : f32 to vector<8x64xf32>
    %311 = arith.mulf %310, %309 : vector<8x64xf32>
    %cst_93 = arith.constant 5.000000e-01 : f32
    %312 = vector.broadcast %cst_93 : f32 to vector<8x64xf32>
    %313 = arith.addf %311, %312 : vector<8x64xf32>
    %314 = vector.extract_strided_slice %292 {offsets = [0, 128], sizes = [8, 64], strides = [1, 1]} : vector<8x192xf32> to vector<8x64xf32>
    %315 = vector.extract_strided_slice %293 {offsets = [0, 128], sizes = [8, 64], strides = [1, 1]} : vector<8x192xf32> to vector<8x64xf32>
    %316 = vector.broadcast %284 : vector<1x64xf32> to vector<8x64xf32>
    %317 = arith.addf %315, %316 : vector<8x64xf32>
    %318 = arith.mulf %303, %317 : vector<8x64xf32>
    %319 = arith.addf %314, %318 : vector<8x64xf32>
    %320 = math.tanh %319 : vector<8x64xf32>
    %cst_94 = arith.constant 1.000000e+00 : f32
    %321 = vector.broadcast %cst_94 : f32 to vector<8x64xf32>
    %322 = arith.subf %321, %313 : vector<8x64xf32>
    %323 = arith.mulf %322, %320 : vector<8x64xf32>
    %324 = arith.mulf %313, %280 : vector<8x64xf32>
    %325 = arith.addf %323, %324 : vector<8x64xf32>
    %326 = vector.broadcast %285 : vector<1x64xf32> to vector<8x64xf32>
    %327 = arith.mulf %325, %326 : vector<8x64xf32>
    %cst_95 = arith.constant dense<0.000000e+00> : vector<8xf32>
    %328 = vector.multi_reduction <add>, %327, %cst_95 [1] : vector<8x64xf32> to vector<8xf32>
    %329 = vector.shape_cast %328 : vector<8xf32> to vector<8x1xf32>
    %330 = vector.broadcast %286 : vector<1x1xf32> to vector<8x1xf32>
    %331 = arith.addf %329, %330 : vector<8x1xf32>
    %332 = vector.broadcast %331 : vector<8x1xf32> to vector<8x192xf32>
    %333 = vector.broadcast %281 : vector<1x192xf32> to vector<8x192xf32>
    %334 = arith.mulf %332, %333 : vector<8x192xf32>
    %335 = vector.broadcast %282 : vector<1x192xf32> to vector<8x192xf32>
    %336 = arith.addf %334, %335 : vector<8x192xf32>
    %cst_96 = arith.constant dense<0.000000e+00> : vector<8x192xf32>
    %337 = tpu.matmul %325, %283, %cst_96 {dimension_numbers = #tpu.dot_dimension_numbers<[1], [0], [0], [1], [0, 0, 1, 1], [], []>} : vector<8x64xf32>, vector<64x192xf32>, vector<8x192xf32> -> vector<8x192xf32>
    %338 = vector.extract_strided_slice %336 {offsets = [0, 0], sizes = [8, 64], strides = [1, 1]} : vector<8x192xf32> to vector<8x64xf32>
    %339 = vector.extract_strided_slice %337 {offsets = [0, 0], sizes = [8, 64], strides = [1, 1]} : vector<8x192xf32> to vector<8x64xf32>
    %340 = arith.addf %338, %339 : vector<8x64xf32>
    %cst_97 = arith.constant 5.000000e-01 : f32
    %341 = vector.broadcast %cst_97 : f32 to vector<8x64xf32>
    %342 = arith.mulf %341, %340 : vector<8x64xf32>
    %343 = math.tanh %342 : vector<8x64xf32>
    %cst_98 = arith.constant 5.000000e-01 : f32
    %344 = vector.broadcast %cst_98 : f32 to vector<8x64xf32>
    %345 = arith.mulf %344, %343 : vector<8x64xf32>
    %cst_99 = arith.constant 5.000000e-01 : f32
    %346 = vector.broadcast %cst_99 : f32 to vector<8x64xf32>
    %347 = arith.addf %345, %346 : vector<8x64xf32>
    %348 = vector.extract_strided_slice %336 {offsets = [0, 64], sizes = [8, 64], strides = [1, 1]} : vector<8x192xf32> to vector<8x64xf32>
    %349 = vector.extract_strided_slice %337 {offsets = [0, 64], sizes = [8, 64], strides = [1, 1]} : vector<8x192xf32> to vector<8x64xf32>
    %350 = arith.addf %348, %349 : vector<8x64xf32>
    %cst_100 = arith.constant 5.000000e-01 : f32
    %351 = vector.broadcast %cst_100 : f32 to vector<8x64xf32>
    %352 = arith.mulf %351, %350 : vector<8x64xf32>
    %353 = math.tanh %352 : vector<8x64xf32>
    %cst_101 = arith.constant 5.000000e-01 : f32
    %354 = vector.broadcast %cst_101 : f32 to vector<8x64xf32>
    %355 = arith.mulf %354, %353 : vector<8x64xf32>
    %cst_102 = arith.constant 5.000000e-01 : f32
    %356 = vector.broadcast %cst_102 : f32 to vector<8x64xf32>
    %357 = arith.addf %355, %356 : vector<8x64xf32>
    %358 = vector.extract_strided_slice %336 {offsets = [0, 128], sizes = [8, 64], strides = [1, 1]} : vector<8x192xf32> to vector<8x64xf32>
    %359 = vector.extract_strided_slice %337 {offsets = [0, 128], sizes = [8, 64], strides = [1, 1]} : vector<8x192xf32> to vector<8x64xf32>
    %360 = vector.broadcast %284 : vector<1x64xf32> to vector<8x64xf32>
    %361 = arith.addf %359, %360 : vector<8x64xf32>
    %362 = arith.mulf %347, %361 : vector<8x64xf32>
    %363 = arith.addf %358, %362 : vector<8x64xf32>
    %364 = math.tanh %363 : vector<8x64xf32>
    %cst_103 = arith.constant 1.000000e+00 : f32
    %365 = vector.broadcast %cst_103 : f32 to vector<8x64xf32>
    %366 = arith.subf %365, %357 : vector<8x64xf32>
    %367 = arith.mulf %366, %364 : vector<8x64xf32>
    %368 = arith.mulf %357, %325 : vector<8x64xf32>
    %369 = arith.addf %367, %368 : vector<8x64xf32>
    %370 = vector.broadcast %285 : vector<1x64xf32> to vector<8x64xf32>
    %371 = arith.mulf %369, %370 : vector<8x64xf32>
    %cst_104 = arith.constant dense<0.000000e+00> : vector<8xf32>
    %372 = vector.multi_reduction <add>, %371, %cst_104 [1] : vector<8x64xf32> to vector<8xf32>
    %373 = vector.shape_cast %372 : vector<8xf32> to vector<8x1xf32>
    %374 = vector.broadcast %286 : vector<1x1xf32> to vector<8x1xf32>
    %375 = arith.addf %373, %374 : vector<8x1xf32>
    %376 = vector.broadcast %375 : vector<8x1xf32> to vector<8x192xf32>
    %377 = vector.broadcast %281 : vector<1x192xf32> to vector<8x192xf32>
    %378 = arith.mulf %376, %377 : vector<8x192xf32>
    %379 = vector.broadcast %282 : vector<1x192xf32> to vector<8x192xf32>
    %380 = arith.addf %378, %379 : vector<8x192xf32>
    %cst_105 = arith.constant dense<0.000000e+00> : vector<8x192xf32>
    %381 = tpu.matmul %369, %283, %cst_105 {dimension_numbers = #tpu.dot_dimension_numbers<[1], [0], [0], [1], [0, 0, 1, 1], [], []>} : vector<8x64xf32>, vector<64x192xf32>, vector<8x192xf32> -> vector<8x192xf32>
    %382 = vector.extract_strided_slice %380 {offsets = [0, 0], sizes = [8, 64], strides = [1, 1]} : vector<8x192xf32> to vector<8x64xf32>
    %383 = vector.extract_strided_slice %381 {offsets = [0, 0], sizes = [8, 64], strides = [1, 1]} : vector<8x192xf32> to vector<8x64xf32>
    %384 = arith.addf %382, %383 : vector<8x64xf32>
    %cst_106 = arith.constant 5.000000e-01 : f32
    %385 = vector.broadcast %cst_106 : f32 to vector<8x64xf32>
    %386 = arith.mulf %385, %384 : vector<8x64xf32>
    %387 = math.tanh %386 : vector<8x64xf32>
    %cst_107 = arith.constant 5.000000e-01 : f32
    %388 = vector.broadcast %cst_107 : f32 to vector<8x64xf32>
    %389 = arith.mulf %388, %387 : vector<8x64xf32>
    %cst_108 = arith.constant 5.000000e-01 : f32
    %390 = vector.broadcast %cst_108 : f32 to vector<8x64xf32>
    %391 = arith.addf %389, %390 : vector<8x64xf32>
    %392 = vector.extract_strided_slice %380 {offsets = [0, 64], sizes = [8, 64], strides = [1, 1]} : vector<8x192xf32> to vector<8x64xf32>
    %393 = vector.extract_strided_slice %381 {offsets = [0, 64], sizes = [8, 64], strides = [1, 1]} : vector<8x192xf32> to vector<8x64xf32>
    %394 = arith.addf %392, %393 : vector<8x64xf32>
    %cst_109 = arith.constant 5.000000e-01 : f32
    %395 = vector.broadcast %cst_109 : f32 to vector<8x64xf32>
    %396 = arith.mulf %395, %394 : vector<8x64xf32>
    %397 = math.tanh %396 : vector<8x64xf32>
    %cst_110 = arith.constant 5.000000e-01 : f32
    %398 = vector.broadcast %cst_110 : f32 to vector<8x64xf32>
    %399 = arith.mulf %398, %397 : vector<8x64xf32>
    %cst_111 = arith.constant 5.000000e-01 : f32
    %400 = vector.broadcast %cst_111 : f32 to vector<8x64xf32>
    %401 = arith.addf %399, %400 : vector<8x64xf32>
    %402 = vector.extract_strided_slice %380 {offsets = [0, 128], sizes = [8, 64], strides = [1, 1]} : vector<8x192xf32> to vector<8x64xf32>
    %403 = vector.extract_strided_slice %381 {offsets = [0, 128], sizes = [8, 64], strides = [1, 1]} : vector<8x192xf32> to vector<8x64xf32>
    %404 = vector.broadcast %284 : vector<1x64xf32> to vector<8x64xf32>
    %405 = arith.addf %403, %404 : vector<8x64xf32>
    %406 = arith.mulf %391, %405 : vector<8x64xf32>
    %407 = arith.addf %402, %406 : vector<8x64xf32>
    %408 = math.tanh %407 : vector<8x64xf32>
    %cst_112 = arith.constant 1.000000e+00 : f32
    %409 = vector.broadcast %cst_112 : f32 to vector<8x64xf32>
    %410 = arith.subf %409, %401 : vector<8x64xf32>
    %411 = arith.mulf %410, %408 : vector<8x64xf32>
    %412 = arith.mulf %401, %369 : vector<8x64xf32>
    %413 = arith.addf %411, %412 : vector<8x64xf32>
    %414 = vector.broadcast %285 : vector<1x64xf32> to vector<8x64xf32>
    %415 = arith.mulf %413, %414 : vector<8x64xf32>
    %cst_113 = arith.constant dense<0.000000e+00> : vector<8xf32>
    %416 = vector.multi_reduction <add>, %415, %cst_113 [1] : vector<8x64xf32> to vector<8xf32>
    %417 = vector.shape_cast %416 : vector<8xf32> to vector<8x1xf32>
    %418 = vector.broadcast %286 : vector<1x1xf32> to vector<8x1xf32>
    %419 = arith.addf %417, %418 : vector<8x1xf32>
    %420 = tpu.concatenate %331, %375, %419 in 1 : vector<8x1xf32>, vector<8x1xf32>, vector<8x1xf32> -> vector<8x3xf32>
    %c0_114 = arith.constant 0 : index
    %c0_115 = arith.constant 0 : index
    %421 = vector.load %arg11[%c0_114, %c0_115] : memref<8x3xf32, #tpu.memory_space<vmem>>, vector<8x3xf32>
    tpu.vector_store %arg11[%c0_114, %c0_115], %420 {strides = array<i32>} : memref<8x3xf32, #tpu.memory_space<vmem>>, vector<8x3xf32>,
    return
  }
}

</mosaic_0001>

<bundles_post_ra>
// kernel: tpu_custom_call.1
= control target key start
LH: loop header
LB: loop body
LE: loop exit
PB: predicated region body
PF: predicated region fallthrough
CT: control target
= control target key end

     0   :  { %s2017_s0 = inlined_call_operand.vmem [shape: f32[64,11], index: 0, kind: input, shape index: {}]   ;;  %s2018_s1 = inlined_call_operand.vmem [shape: f32[11,192], index: 1, kind: input, shape index: {}]   ;;  %s2019_s2 = inlined_call_operand.vmem [shape: f32[1,192], index: 2, kind: input, shape index: {}]   ;;  %s2020_s3 = inlined_call_operand.hbm [shape: f32[64,192], index: 3, kind: input, shape index: {}]   ;;  %s2021_s4 = inlined_call_operand.vmem [shape: f32[1,64], index: 4, kind: input, shape index: {}]   ;;  %s2022_s5 = inlined_call_operand.vmem [shape: f32[1,192], index: 5, kind: input, shape index: {}]   ;;  %s2023_s6 = inlined_call_operand.vmem [shape: f32[1,192], index: 6, kind: input, shape index: {}]   ;;  %s2024_s7 = inlined_call_operand.hbm [shape: f32[64,192], index: 7, kind: input, shape index: {}]   ;;  %s2025_s8 = inlined_call_operand.vmem [shape: f32[1,64], index: 8, kind: input, shape index: {}]   ;;  %s2026_s9 = inlined_call_operand.vmem [shape: f32[1,64], index: 9, kind: input, shape index: {}]   ;;  %s2027_s10 = inlined_call_operand.<no memory space> [shape: f32[1,1], index: 10, kind: input, shape index: {}]   ;;  %s2028_s11 = inlined_call_operand.vmem [shape: f32[8,3], index: 11, kind: output, shape index: {}]  }
   0x1   :  { %v16_v0 = vstv %s2027_s10 }
   0x2   :  { %17 = vst [vmem:[#allocation2] sm:$0x1] %v16_v0 }
   0x3   :  { %18 = vsyncpa [#allocation4], 0 }
   0x4   :  { %19 = vsyncpa [#allocation6], 0  ;;  %s1540_s19 = smov [#allocation3]  }
   0x5   :  { %s31_s20 = sshll.u32 %s1540_s19, 4  ;;  %s32_s20 = int_to_ptr.vmem [resolvable:$true] %s31_s20 }
   0x6   :  { %s1504_s21 = scalar_lea.vmem %s32_s20, 2048  ;;  %p1509_p1 = scmp.lt.s32.totalorder %s32_s20, %s32_s20 }
   0x7   :  { %p1505_p0 = scmp.ne.s32.totalorder %s32_s20, %s1504_s21  ;;  %p1510_p2 = scmp.lt.s32.totalorder %s1504_s21, %s1504_s21 }
   0x9   :  { %p1511_p3 = por %p1510_p2, %p1509_p1 }
   0xb   :  { %p1512_p4 = pnand %p1511_p3, %p1505_p0 }
   0xd   :  { %1515 = shalt.err (!%p1512_p4)
}
   0xe   :  { %s1541_s22 = smov 256   ;;  %s1542_s23 = smov 16  }
   0xf   :  { %37 = dma.hbm_to_vmem [thread:$0]  %s2020_s3, 2048, %s32_s20, [#allocation4], %s1541_s22, %s1541_s22, %s1542_s23  }
  0x10   :  { %s1543_s10 = smov [#allocation5]  }
  0x11   :  { %s49_s26 = sshll.u32 %s1543_s10, 4  ;;  %s50_s26 = int_to_ptr.vmem [resolvable:$true] %s49_s26 }
  0x12   :  { %s1524_s27 = scalar_lea.vmem %s50_s26, 2048  ;;  %p1529_p6 = scmp.lt.s32.totalorder %s50_s26, %s50_s26 }
  0x13   :  { %p1525_p5 = scmp.ne.s32.totalorder %s50_s26, %s1524_s27  ;;  %p1530_p7 = scmp.lt.s32.totalorder %s1524_s27, %s1524_s27 }
  0x15   :  { %p1531_p8 = por %p1530_p7, %p1529_p6 }
  0x17   :  { %p1532_p9 = pnand %p1531_p8, %p1525_p5 }
  0x19   :  { %1535 = shalt.err (!%p1532_p9)
}
  0x1a   :  { %55 = dma.hbm_to_vmem [thread:$0]  %s2024_s7, 2048, %s50_s26, [#allocation6], %s1541_s22, %s1541_s22, %s1542_s23  }
  0x1b   :  { %1536 = dma.done.wait [#allocation4], 2048  }
  0x1c   :  { %1537 = vsyncadd [#allocation4], 4294965248 }
  0x1d   :  { %1538 = dma.done.wait [#allocation6], 2048  }
  0x1e   :  { %1539 = vsyncadd [#allocation6], 4294965248  ;;  %v1544_v1 = vmov 0.0   ;;  %v1620_v2 = vld [vmem:[#allocation3 + $0x78] sm:$0xff]  ;;  %v1622_v3 = vld [vmem:[#allocation3 + $0x70] sm:$0xff]  ;;  %vm117_vm0 = vcmask 1042432   ;;  %v82_v23 = vlaneseq }
  0x1f   :  { %188 = vmatprep.mubr.f32.mxu0 %v1544_v1  ;;  %322 = vmatprep.mubr.f32.mxu1 %v1544_v1  ;;  %v1624_v4 = vld [vmem:[#allocation3 + $0x68] sm:$0xff]  ;;  %v1627_v5 = vld [vmem:[#allocation3 + $0x60] sm:$0xff]  ;;  %v1630_v6 = vld [vmem:[#allocation3 + $0x58] sm:$0xff]  ;;  %vm92_vm1 = vcmask 89088   ;;  %vm254_vm2 = vcmask 523264   ;;  %s1548_s17 = smov 2  }
  0x20   :  { %274 = vmatprep.subr.mxu1 %v1620_v2  ;;  %v79_v7 = vld [vmem:[%s2018_s1 + $0x18] sm:$0x7]  ;;  %v78_v9 = vld [vmem:[%s2018_s1 + $0x10] sm:$0x7]  ;;  %v77_v11 = vld [vmem:[%s2018_s1 + $0x8] sm:$0xff]  ;;  %v83_v24 = vshrl.u32 %v82_v23, 7 }
  0x21   :  { %275 = vmatpush1.msra.mxu1 %v1622_v3  ;;  %v1636_v8 = vld [vmem:[#allocation3 + $0x50] sm:$0xff]  ;;  %1417 = vmatprep.subr.msk.mxu0 %vm117_vm0, %v79_v7  ;;  %v1642_v10 = vld [vmem:[#allocation3 + $0x48] sm:$0xff]  ;;  %v76_v12 = vld [vmem:[%s2018_s1] sm:$0xff]  ;;  %vm1405_vm3 = vcmask 7168   ;;  %vm1407_vm4 = vcmask 15360   ;;  %vm1409_vm5 = vcmask 23552  }
  0x22   :  { %276 = vmatprep.subr.mxu1 %v1624_v4  ;;  %1418 = vmatpush1.msk.msra.mxu0 %vm117_vm0, %v78_v9  ;;  %v1651_v13 = vld [vmem:[#allocation3 + $0x40] sm:$0xff]  ;;  %v1657_v15 = vld [vmem:[#allocation3 + $0x38] sm:$0xff]  ;;  %v1660_v16 = vld [vmem:[#allocation3 + $0x30] sm:$0xff]  ;;  %v1721_v25 = vsub.s32 0, %v83_v24  ;;  %v1730_v33 = vsub.s32 1, %v83_v24 }
  0x23   :  { %277 = vmatpush1.msra.mxu1 %v1627_v5  ;;  %154 = vmatprep.subr.mxu0 %v77_v11  ;;  %v68_v14 = vld [vmem:[%s2017_s0] sm:$0xff]  ;;  %v1664_v17 = vld [vmem:[#allocation3 + $0x28] sm:$0xff]  ;;  %v1676_v20 = vld [vmem:[#allocation3 + $0x10] sm:$0xff] }
  0x24   :  { %278 = vmatprep.subr.mxu1 %v1630_v6  ;;  %155 = vmatpush1.msra.mxu0 %v76_v12  ;;  %v1668_v18 = vld [vmem:[#allocation3 + $0x20] sm:$0xff]  ;;  %v1672_v19 = vld [vmem:[#allocation3 + $0x18] sm:$0xff]  ;;  %v1680_v21 = vld [vmem:[#allocation3 + $0x8] sm:$0xff] }
  0x25   :  { %279 = vmatpush1.msra.mxu1 %v1636_v8  ;;  %1419 = vmatmul.mubr.msk.f32.vlgmr.msra.gmra.mxu0 %vm92_vm1, %v68_v14  ;;  %v1684_v22 = vld [vmem:[#allocation3] sm:$0xff]  ;;  %v1735_v35 = vld [vmem:[%s2021_s4] ss:$0 sm:$0xff]  ;;  %s1545_s4 = smov 64   ;;  %v70_v11 = vld [vmem:[%s2017_s0 + $0x10] sm:$0xff] }
  0x26   :  { %280 = vmatprep.subr.mxu1 %v1642_v10  ;;  %194 = vmatprep.mubr.f32.mxu0 %v1544_v1  ;;  %v80_v26 = vld [vmem:[%s2019_s2] sm:$0x3]  ;;  %v69_v45 = vld [vmem:[%s2017_s0 + $0x8] sm:$0xff]  ;;  %v71_v12 = vld [vmem:[%s2017_s0 + $0x18] sm:$0xff] }
  0x27   :  { %281 = vmatpush1.msra.mxu1 %v1651_v13  ;;  %466 = vmatprep.subr.mxu0 %v1620_v2  ;;  %v1727_v27 = vrot.slane %v80_v26, %v1721_v25  ;;  %v1738_v37 = vrot.slane %v80_v26, %v1730_v33  ;;  %v72_v14 = vld [vmem:[%s2017_s0 + $0x20] sm:$0xff]  ;;  %v73_v24 = vld [vmem:[%s2017_s0 + $0x28] sm:$0xff]  ;;  %v74_v26 = vld [vmem:[%s2017_s0 + $0x30] sm:$0xff] }
  0x28   :  { %282 = vmatprep.subr.mxu1 %v1657_v15  ;;  %467 = vmatpush1.msra.mxu0 %v1622_v3 }
  0x29   :  { %283 = vmatpush1.msra.mxu1 %v1660_v16  ;;  %468 = vmatprep.subr.mxu0 %v1624_v4 }
  0x2a   :  { %284 = vmatprep.subr.mxu1 %v1664_v17  ;;  %469 = vmatpush1.msra.mxu0 %v1627_v5 }
  0x2b   :  { %285 = vmatpush1.msra.mxu1 %v1668_v18  ;;  %470 = vmatprep.subr.mxu0 %v1630_v6 }
  0x2c   :  { %286 = vmatprep.subr.mxu1 %v1672_v19  ;;  %471 = vmatpush1.msra.mxu0 %v1636_v8 }
  0x2d   :  { %287 = vmatpush1.msra.mxu1 %v1676_v20  ;;  %472 = vmatprep.subr.mxu0 %v1642_v10 }
  0x2e   :  { %288 = vmatprep.subr.mxu1 %v1680_v21  ;;  %473 = vmatpush1.msra.mxu0 %v1651_v13 }
  0x2f   :  { %289 = vmatpush1.msra.mxu1 %v1684_v22  ;;  %474 = vmatprep.subr.mxu0 %v1657_v15 }
  0x30   :  { %323 = vmatmul.mubr.f32.vlgmr.msra.gmra.mxu1 %v1544_v1  ;;  %373 = vmatprep.subr.mxu1 %v1620_v2 }
  0x31   :  { %374 = vmatpush1.msra.mxu1 %v1622_v3  ;;  %421 = vmatprep.mubr.f32.mxu1 %v1544_v1 }
  0x32   :  { %375 = vmatprep.subr.mxu1 %v1624_v4  ;;  %475 = vmatpush1.msra.mxu0 %v1660_v16 }
  0x33   :  { %376 = vmatpush1.msra.mxu1 %v1627_v5  ;;  %476 = vmatprep.subr.mxu0 %v1664_v17 }
  0x34   :  { %377 = vmatprep.subr.mxu1 %v1630_v6  ;;  %477 = vmatpush1.msra.mxu0 %v1668_v18 }
  0x35   :  { %378 = vmatpush1.msra.mxu1 %v1636_v8  ;;  %478 = vmatprep.subr.mxu0 %v1672_v19 }
  0x36   :  { %379 = vmatprep.subr.mxu1 %v1642_v10  ;;  %479 = vmatpush1.msra.mxu0 %v1676_v20 }
  0x37   :  { %380 = vmatpush1.msra.mxu1 %v1651_v13  ;;  %480 = vmatprep.subr.mxu0 %v1680_v21 }
  0x38   :  { %381 = vmatprep.subr.mxu1 %v1657_v15  ;;  %481 = vmatpush1.msra.mxu0 %v1684_v22 }
  0x39   :  { %382 = vmatpush1.msra.mxu1 %v1660_v16  ;;  %652 = vmatprep.subr.mxu0 %v1620_v2 }
  0x3a   :  { %383 = vmatprep.subr.mxu1 %v1664_v17  ;;  %1420 = vmatmul.mubr.msk.f32.gmra.mxu0 %vm92_vm1, %v69_v45 }
  0x3b   :  { %384 = vmatpush1.msra.mxu1 %v1668_v18  ;;  %200 = vmatprep.mubr.f32.mxu0 %v1544_v1 }
  0x3c   :  { %385 = vmatprep.subr.mxu1 %v1672_v19 }
  0x3d   :  { %386 = vmatpush1.msra.mxu1 %v1676_v20 }
  0x3e   :  { %387 = vmatprep.subr.mxu1 %v1680_v21  ;;  %1421 = vmatmul.mubr.msk.f32.gmra.mxu0 %vm92_vm1, %v70_v11 }
  0x3f   :  { %388 = vmatpush1.msra.mxu1 %v1684_v22  ;;  %206 = vmatprep.mubr.f32.mxu0 %v1544_v1 }
  0x40   :  { %559 = vmatprep.subr.mxu1 %v1620_v2 }
  0x42   :  { %1422 = vmatmul.mubr.msk.f32.gmra.mxu0 %vm92_vm1, %v71_v12 }
  0x43   :  { %212 = vmatprep.mubr.f32.mxu0 %v1544_v1 }
  0x46   :  { %1423 = vmatmul.mubr.msk.f32.gmra.mxu0 %vm92_vm1, %v72_v14 }
  0x47   :  { %218 = vmatprep.mubr.f32.mxu0 %v1544_v1 }
  0x4a   :  { %1424 = vmatmul.mubr.msk.f32.gmra.mxu0 %vm92_vm1, %v73_v24 }
  0x4b   :  { %224 = vmatprep.mubr.f32.mxu0 %v1544_v1 }
  0x4e   :  { %1425 = vmatmul.mubr.msk.f32.gmra.mxu0 %vm92_vm1, %v74_v26 }
  0x4f   :  { %230 = vmatprep.mubr.f32.mxu0 %v1544_v1 }
  0xe5   :  { %v190_v28 = vpop.f32.mrf.mxu0 }
  0xe6   :  { %v191_v29 = vadd.f32 %v190_v28, %v1727_v27  ;;  %v1799_v28 = vld [vmem:[%s2017_s0 + $0x38] sm:$0xff] }
  0xe7   :  { %v192_v39 = vpop.f32.mrf.mxu0  ;;  %1426 = vmatmul.mubr.msk.f32.gmra.mxu0 %vm92_vm1, %v1799_v28 }
  0xe8   :  { %v193_v42 = vadd.f32 %v192_v39, %v1738_v37  ;;  %514 = vmatprep.mubr.f32.mxu0 %v1544_v1 }
  0xf0   :  { %v324_v30 = vpop.f32.mrf.mxu1 }
  0xf1   :  { %v329_v31 = vadd.f32 %v324_v30, %v191_v29 }
  0xf2   :  { %v326_v36 = vpop.f32.mrf.mxu1 }
  0xf3   :  { %v330_v32 = vmul.f32 0.5, %v329_v31  ;;  %v340_v41 = vadd.f32 %v1735_v35, %v326_v36 }
  0xf5   :  { %1452 = vtanh.f32 %v330_v32 }
  0xfa   :  { %v196_v53 = vpop.f32.mrf.mxu0 }
  0xfb   :  { %v197_v54 = vadd.f32 %v196_v53, %v1727_v27 }
  0xfc   :  { %v198_v61 = vpop.f32.mrf.mxu0 }
  0xfd   :  { %v199_v0 = vadd.f32 %v198_v61, %v1738_v37 }
 0x102   :  { %v1453_v34 = vpop.eup %1452 }
 0x103   :  { %v332_v38 = vmul.f32 0.5, %v1453_v34 }
 0x105   :  { %v333_v40 = vadd.f32 0.5, %v332_v38  ;;  %v202_v38 = vpop.f32.mrf.mxu0 }
 0x107   :  { %v341_v43 = vmul.f32 %v340_v41, %v333_v40  ;;  %v344_v47 = vsub.f32 1.0, %v333_v40  ;;  %v350_v49 = vmul.f32 0.0, %v333_v40  ;;  %v204_v39 = vpop.f32.mrf.mxu0 }
 0x109   :  { %v342_v44 = vadd.f32 %v341_v43, %v193_v42  ;;  %v208_v40 = vpop.f32.mrf.mxu0 }
 0x10a   :  { %v209_v14 = vadd.f32 %v208_v40, %v1727_v27 }
 0x10b   :  { %1454 = vtanh.f32 %v342_v44  ;;  %v210_v41 = vpop.f32.mrf.mxu0 }
 0x10d   :  { %v1823_v42 = vpop.f32.mrf.mxu0 }
 0x10f   :  { %v1825_v43 = vpop.f32.mrf.mxu0 }
 0x111   :  { %v1827_v44 = vpop.f32.mrf.mxu0 }
 0x113   :  { %v1829_v45 = vpop.f32.mrf.mxu0 }
 0x118   :  { %v1455_v46 = vpop.eup %1454 }
 0x119   :  { %346 = vrot.lane.b32.xlu0 %v1455_v46, %s1545_s4  ;;  %v1831_v46 = vpop.f32.mrf.mxu0 }
 0x18b   :  { %v347_v48 = vpop.permute.xlu0 %346 }
 0x18c   :  { %v349_v50 = vmul.f32 %v347_v48, %v344_v47  ;;  %v1833_v47 = vpop.f32.mrf.mxu0 }
 0x18e   :  { %v351_v51 = vadd.f32 %v350_v49, %v349_v50  ;;  %v203_v50 = vadd.f32 %v202_v38, %v1727_v27 }
 0x190   :  { %353 = vrot.lane.b32.xlu0 %v351_v51, %s1545_s4 }
 0x1a7   :  { %v1835_v48 = vpop.f32.mrf.mxu0 }
 0x1a9   :  { %v1837_v49 = vpop.f32.mrf.mxu0 }
 0x202   :  { %v354_v52 = vpop.permute.xlu0 %353 }
 0x203   :  { %1428 = vmatmul.mubr.msk.f32.vlgmr.msra.gmra.mxu1 %vm254_vm2, %v354_v52 }
 0x204   :  { %560 = vmatpush1.msra.mxu1 %v1622_v3  ;;  %607 = vmatprep.mubr.f32.mxu1 %v1544_v1 }
 0x205   :  { %561 = vmatprep.subr.mxu1 %v1624_v4 }
 0x206   :  { %562 = vmatpush1.msra.mxu1 %v1627_v5 }
 0x207   :  { %563 = vmatprep.subr.mxu1 %v1630_v6 }
 0x208   :  { %564 = vmatpush1.msra.mxu1 %v1636_v8 }
 0x209   :  { %565 = vmatprep.subr.mxu1 %v1642_v10 }
 0x20a   :  { %566 = vmatpush1.msra.mxu1 %v1651_v13 }
 0x20b   :  { %567 = vmatprep.subr.mxu1 %v1657_v15 }
 0x20c   :  { %568 = vmatpush1.msra.mxu1 %v1660_v16 }
 0x20d   :  { %569 = vmatprep.subr.mxu1 %v1664_v17 }
 0x20e   :  { %570 = vmatpush1.msra.mxu1 %v1668_v18 }
 0x20f   :  { %571 = vmatprep.subr.mxu1 %v1672_v19 }
 0x210   :  { %572 = vmatpush1.msra.mxu1 %v1676_v20 }
 0x211   :  { %573 = vmatprep.subr.mxu1 %v1680_v21 }
 0x212   :  { %574 = vmatpush1.msra.mxu1 %v1684_v22 }
 0x213   :  { %745 = vmatprep.subr.mxu1 %v1620_v2 }
 0x2c3   :  { %v423_v55 = vpop.f32.mrf.mxu1 }
 0x2c4   :  { %v428_v56 = vadd.f32 %v423_v55, %v197_v54 }
 0x2c5   :  { %v425_v59 = vpop.f32.mrf.mxu1 }
 0x2c6   :  { %v429_v57 = vmul.f32 0.5, %v428_v56  ;;  %v433_v63 = vadd.f32 %v1735_v35, %v425_v59  ;;  %v205_v59 = vadd.f32 %v204_v39, %v1738_v37 }
 0x2c8   :  { %1456 = vtanh.f32 %v429_v57 }
 0x2d5   :  { %v1457_v58 = vpop.eup %1456 }
 0x2d6   :  { %v431_v60 = vmul.f32 0.5, %v1457_v58 }
 0x2d8   :  { %v432_v62 = vadd.f32 0.5, %v431_v60 }
 0x2da   :  { %v434_v7 = vmul.f32 %v433_v63, %v432_v62  ;;  %v437_v29 = vsub.f32 1.0, %v432_v62  ;;  %v443_v31 = vmul.f32 %v432_v62, %v351_v51 }
 0x2dc   :  { %v435_v9 = vadd.f32 %v434_v7, %v199_v0 }
 0x2de   :  { %1458 = vtanh.f32 %v435_v9 }
 0x2eb   :  { %v1459_v23 = vpop.eup %1458 }
 0x2ec   :  { %439 = vrot.lane.b32.xlu1 %v1459_v23, %s1545_s4 }
 0x35e   :  { %v440_v30 = vpop.permute.xlu1 %439 }
 0x35f   :  { %v442_v32 = vmul.f32 %v440_v30, %v437_v29 }
 0x361   :  { %v444_v34 = vadd.f32 %v443_v31, %v442_v32 }
 0x363   :  { %446 = vrot.lane.b32.xlu1 %v444_v34, %s1545_s4 }
 0x3d5   :  { %v447_v36 = vpop.permute.xlu1 %446 }
 0x3d6   :  { %1429 = vmatmul.mubr.msk.f32.vlgmr.msra.gmra.mxu0 %vm254_vm2, %v447_v36  ;;  %v211_v36 = vadd.f32 %v210_v41, %v1738_v37  ;;  %v215_v41 = vadd.f32 %v1823_v42, %v1727_v27 }
 0x3d7   :  { %653 = vmatpush1.msra.mxu0 %v1622_v3  ;;  %700 = vmatprep.mubr.f32.mxu0 %v1544_v1 }
 0x3d8   :  { %654 = vmatprep.subr.mxu0 %v1624_v4 }
 0x3d9   :  { %655 = vmatpush1.msra.mxu0 %v1627_v5 }
 0x3da   :  { %656 = vmatprep.subr.mxu0 %v1630_v6 }
 0x3db   :  { %657 = vmatpush1.msra.mxu0 %v1636_v8 }
 0x3dc   :  { %658 = vmatprep.subr.mxu0 %v1642_v10 }
 0x3dd   :  { %659 = vmatpush1.msra.mxu0 %v1651_v13 }
 0x3de   :  { %660 = vmatprep.subr.mxu0 %v1657_v15 }
 0x3df   :  { %661 = vmatpush1.msra.mxu0 %v1660_v16 }
 0x3e0   :  { %662 = vmatprep.subr.mxu0 %v1664_v17 }
 0x3e1   :  { %663 = vmatpush1.msra.mxu0 %v1668_v18 }
 0x3e2   :  { %664 = vmatprep.subr.mxu0 %v1672_v19 }
 0x3e3   :  { %665 = vmatpush1.msra.mxu0 %v1676_v20 }
 0x3e4   :  { %666 = vmatprep.subr.mxu0 %v1680_v21 }
 0x3e5   :  { %667 = vmatpush1.msra.mxu0 %v1684_v22 }
 0x3e6   :  { %838 = vmatprep.subr.mxu0 %v1620_v2 }
 0x496   :  { %v516_v51 = vpop.f32.mrf.mxu0 }
 0x497   :  { %v521_v52 = vadd.f32 %v516_v51, %v203_v50 }
 0x498   :  { %v518_v55 = vpop.f32.mrf.mxu0 }
 0x499   :  { %v522_v53 = vmul.f32 0.5, %v521_v52  ;;  %v526_v58 = vadd.f32 %v1735_v35, %v518_v55 }
 0x49b   :  { %1460 = vtanh.f32 %v522_v53 }
 0x4a8   :  { %v1461_v54 = vpop.eup %1460 }
 0x4a9   :  { %v524_v56 = vmul.f32 0.5, %v1461_v54 }
 0x4ab   :  { %v525_v57 = vadd.f32 0.5, %v524_v56 }
 0x4ad   :  { %v527_v60 = vmul.f32 %v526_v58, %v525_v57  ;;  %v530_v63 = vsub.f32 1.0, %v525_v57  ;;  %v536_v7 = vmul.f32 %v525_v57, %v444_v34 }
 0x4af   :  { %v528_v61 = vadd.f32 %v527_v60, %v205_v59 }
 0x4b1   :  { %1462 = vtanh.f32 %v528_v61 }
 0x4be   :  { %v1463_v62 = vpop.eup %1462 }
 0x4bf   :  { %532 = vrot.lane.b32.xlu0 %v1463_v62, %s1545_s4 }
 0x531   :  { %v533_v0 = vpop.permute.xlu0 %532 }
 0x532   :  { %v535_v9 = vmul.f32 %v533_v0, %v530_v63  ;;  %v217_v63 = vadd.f32 %v1825_v43, %v1738_v37 }
 0x534   :  { %v537_v11 = vadd.f32 %v536_v7, %v535_v9 }
 0x536   :  { %539 = vrot.lane.b32.xlu1 %v537_v11, %s1545_s4 }
 0x5a8   :  { %v540_v12 = vpop.permute.xlu1 %539 }
 0x5a9   :  { %1430 = vmatmul.mubr.msk.f32.vlgmr.msra.gmra.mxu1 %vm254_vm2, %v540_v12 }
 0x5aa   :  { %746 = vmatpush1.msra.mxu1 %v1622_v3  ;;  %793 = vmatprep.mubr.f32.mxu1 %v1544_v1 }
 0x5ab   :  { %747 = vmatprep.subr.mxu1 %v1624_v4 }
 0x5ac   :  { %748 = vmatpush1.msra.mxu1 %v1627_v5 }
 0x5ad   :  { %749 = vmatprep.subr.mxu1 %v1630_v6 }
 0x5ae   :  { %750 = vmatpush1.msra.mxu1 %v1636_v8 }
 0x5af   :  { %751 = vmatprep.subr.mxu1 %v1642_v10 }
 0x5b0   :  { %752 = vmatpush1.msra.mxu1 %v1651_v13 }
 0x5b1   :  { %753 = vmatprep.subr.mxu1 %v1657_v15 }
 0x5b2   :  { %754 = vmatpush1.msra.mxu1 %v1660_v16 }
 0x5b3   :  { %755 = vmatprep.subr.mxu1 %v1664_v17 }
 0x5b4   :  { %756 = vmatpush1.msra.mxu1 %v1668_v18 }
 0x5b5   :  { %757 = vmatprep.subr.mxu1 %v1672_v19 }
 0x5b6   :  { %758 = vmatpush1.msra.mxu1 %v1676_v20 }
 0x5b7   :  { %759 = vmatprep.subr.mxu1 %v1680_v21 }
 0x5b8   :  { %760 = vmatpush1.msra.mxu1 %v1684_v22 }
 0x5b9   :  { %931 = vmatprep.subr.mxu1 %v1620_v2 }
 0x669   :  { %v609_v23 = vpop.f32.mrf.mxu1 }
 0x66a   :  { %v614_v24 = vadd.f32 %v609_v23, %v209_v14 }
 0x66b   :  { %v611_v30 = vpop.f32.mrf.mxu1 }
 0x66c   :  { %v615_v26 = vmul.f32 0.5, %v614_v24  ;;  %v619_v34 = vadd.f32 %v1735_v35, %v611_v30 }
 0x66e   :  { %1464 = vtanh.f32 %v615_v26 }
 0x67b   :  { %v1465_v29 = vpop.eup %1464 }
 0x67c   :  { %v617_v31 = vmul.f32 0.5, %v1465_v29 }
 0x67e   :  { %v618_v32 = vadd.f32 0.5, %v617_v31 }
 0x680   :  { %v620_v38 = vmul.f32 %v619_v34, %v618_v32  ;;  %v623_v2 = vsub.f32 1.0, %v618_v32  ;;  %v629_v51 = vmul.f32 %v618_v32, %v537_v11 }
 0x682   :  { %v621_v39 = vadd.f32 %v620_v38, %v211_v36 }
 0x684   :  { %1466 = vtanh.f32 %v621_v39 }
 0x691   :  { %v1467_v50 = vpop.eup %1466 }
 0x692   :  { %625 = vrot.lane.b32.xlu0 %v1467_v50, %s1545_s4 }
 0x704   :  { %v626_v40 = vpop.permute.xlu0 %625 }
 0x705   :  { %v628_v52 = vmul.f32 %v626_v40, %v623_v2  ;;  %v229_v2 = vadd.f32 %v1833_v47, %v1738_v37  ;;  %v233_v47 = vadd.f32 %v1835_v48, %v1727_v27  ;;  %v1018_v48 = vld [vmem:[#allocation5 + $0x68] sm:$0xff] }
 0x707   :  { %v630_v53 = vadd.f32 %v629_v51, %v628_v52 }
 0x709   :  { %632 = vrot.lane.b32.xlu1 %v630_v53, %s1545_s4 }
 0x77b   :  { %v633_v54 = vpop.permute.xlu1 %632 }
 0x77c   :  { %1431 = vmatmul.mubr.msk.f32.vlgmr.msra.gmra.mxu0 %vm254_vm2, %v633_v54 }
 0x77d   :  { %839 = vmatpush1.msra.mxu0 %v1622_v3  ;;  %886 = vmatprep.mubr.f32.mxu0 %v1544_v1 }
 0x77e   :  { %840 = vmatprep.subr.mxu0 %v1624_v4 }
 0x77f   :  { %841 = vmatpush1.msra.mxu0 %v1627_v5 }
 0x780   :  { %842 = vmatprep.subr.mxu0 %v1630_v6 }
 0x781   :  { %843 = vmatpush1.msra.mxu0 %v1636_v8 }
 0x782   :  { %844 = vmatprep.subr.mxu0 %v1642_v10 }
 0x783   :  { %845 = vmatpush1.msra.mxu0 %v1651_v13 }
 0x784   :  { %846 = vmatprep.subr.mxu0 %v1657_v15 }
 0x785   :  { %847 = vmatpush1.msra.mxu0 %v1660_v16 }
 0x786   :  { %848 = vmatprep.subr.mxu0 %v1664_v17 }
 0x787   :  { %849 = vmatpush1.msra.mxu0 %v1668_v18 }
 0x788   :  { %850 = vmatprep.subr.mxu0 %v1672_v19 }
 0x789   :  { %851 = vmatpush1.msra.mxu0 %v1676_v20 }
 0x78a   :  { %852 = vmatprep.subr.mxu0 %v1680_v21 }
 0x78b   :  { %853 = vmatpush1.msra.mxu0 %v1684_v22 }
 0x83c   :  { %v702_v55 = vpop.f32.mrf.mxu0 }
 0x83d   :  { %v707_v56 = vadd.f32 %v702_v55, %v215_v41 }
 0x83e   :  { %v704_v59 = vpop.f32.mrf.mxu0 }
 0x83f   :  { %v708_v57 = vmul.f32 0.5, %v707_v56  ;;  %v712_v62 = vadd.f32 %v1735_v35, %v704_v59 }
 0x841   :  { %1468 = vtanh.f32 %v708_v57 }
 0x84e   :  { %v1469_v58 = vpop.eup %1468 }
 0x84f   :  { %v710_v60 = vmul.f32 0.5, %v1469_v58 }
 0x851   :  { %v711_v61 = vadd.f32 0.5, %v710_v60 }
 0x853   :  { %v713_v0 = vmul.f32 %v712_v62, %v711_v61  ;;  %v716_v42 = vsub.f32 1.0, %v711_v61  ;;  %v722_v12 = vmul.f32 %v711_v61, %v630_v53 }
 0x855   :  { %v714_v7 = vadd.f32 %v713_v0, %v217_v63 }
 0x857   :  { %1470 = vtanh.f32 %v714_v7  ;;  %v235_v7 = vadd.f32 %v1837_v49, %v1738_v37  ;;  %v1012_v49 = vld [vmem:[#allocation5 + $0x38] sm:$0xff] }
 0x864   :  { %v1471_v9 = vpop.eup %1470 }
 0x865   :  { %718 = vrot.lane.b32.xlu0 %v1471_v9, %s1545_s4 }
 0x8d7   :  { %v719_v11 = vpop.permute.xlu0 %718 }
 0x8d8   :  { %v721_v14 = vmul.f32 %v719_v11, %v716_v42  ;;  %v1020_v11 = vld [vmem:[#allocation5 + $0x78] sm:$0xff] }
 0x8d9   :  { %1075 = vmatprep.subr.mxu0 %v1020_v11 }
 0x8da   :  { %v723_v23 = vadd.f32 %v722_v12, %v721_v14  ;;  %v1017_v12 = vld [vmem:[#allocation5 + $0x60] sm:$0xff]  ;;  %v1016_v14 = vld [vmem:[#allocation5 + $0x58] sm:$0xff] }
 0x8dc   :  { %725 = vrot.lane.b32.xlu1 %v723_v23, %s1545_s4 }
 0x94e   :  { %v726_v24 = vpop.permute.xlu1 %725 }
 0x94f   :  { %1432 = vmatmul.mubr.msk.f32.vlgmr.msra.gmra.mxu1 %vm254_vm2, %v726_v24  ;;  %v1011_v24 = vld [vmem:[#allocation5 + $0x30] sm:$0xff] }
 0x950   :  { %932 = vmatpush1.msra.mxu1 %v1622_v3  ;;  %979 = vmatprep.mubr.f32.mxu1 %v1544_v1  ;;  %v221_v3 = vadd.f32 %v1827_v44, %v1727_v27 }
 0x951   :  { %933 = vmatprep.subr.mxu1 %v1624_v4 }
 0x952   :  { %934 = vmatpush1.msra.mxu1 %v1627_v5 }
 0x953   :  { %935 = vmatprep.subr.mxu1 %v1630_v6 }
 0x954   :  { %936 = vmatpush1.msra.mxu1 %v1636_v8 }
 0x955   :  { %937 = vmatprep.subr.mxu1 %v1642_v10 }
 0x956   :  { %938 = vmatpush1.msra.mxu1 %v1651_v13 }
 0x957   :  { %939 = vmatprep.subr.mxu1 %v1657_v15 }
 0x958   :  { %940 = vmatpush1.msra.mxu1 %v1660_v16 }
 0x959   :  { %941 = vmatprep.subr.mxu1 %v1664_v17  ;;  %v223_v17 = vadd.f32 %v1829_v45, %v1738_v37  ;;  %v227_v45 = vadd.f32 %v1831_v46, %v1727_v27  ;;  %v1019_v27 = vld [vmem:[#allocation5 + $0x70] sm:$0xff]  ;;  %v1013_v37 = vld [vmem:[#allocation5 + $0x40] sm:$0xff] }
 0x95a   :  { %942 = vmatpush1.msra.mxu1 %v1668_v18 }
 0x95b   :  { %943 = vmatprep.subr.mxu1 %v1672_v19 }
 0x95c   :  { %944 = vmatpush1.msra.mxu1 %v1676_v20 }
 0x95d   :  { %945 = vmatprep.subr.mxu1 %v1680_v21 }
 0x95e   :  { %946 = vmatpush1.msra.mxu1 %v1684_v22 }
 0x95f   :  { %1206 = vmatprep.subr.mxu1 %v1020_v11 }
 0xa0f   :  { %v795_v4 = vpop.f32.mrf.mxu1 }
 0xa10   :  { %v800_v5 = vadd.f32 %v795_v4, %v221_v3  ;;  %v1010_v4 = vld [vmem:[#allocation5 + $0x28] sm:$0xff] }
 0xa11   :  { %v797_v10 = vpop.f32.mrf.mxu1 }
 0xa12   :  { %v801_v6 = vmul.f32 0.5, %v800_v5  ;;  %v805_v16 = vadd.f32 %v1735_v35, %v797_v10  ;;  %v1009_v5 = vld [vmem:[#allocation5 + $0x20] sm:$0xff]  ;;  %v1006_v10 = vld [vmem:[#allocation5 + $0x8] sm:$0xff] }
 0xa14   :  { %1472 = vtanh.f32 %v801_v6  ;;  %v1008_v6 = vld [vmem:[#allocation5 + $0x18] sm:$0xff] }
 0xa21   :  { %v1473_v8 = vpop.eup %1472 }
 0xa22   :  { %v803_v13 = vmul.f32 0.5, %v1473_v8  ;;  %v1007_v8 = vld [vmem:[#allocation5 + $0x10] sm:$0xff] }
 0xa24   :  { %v804_v15 = vadd.f32 0.5, %v803_v13  ;;  %v1005_v13 = vld [vmem:[#allocation5] sm:$0xff] }
 0xa26   :  { %v806_v18 = vmul.f32 %v805_v16, %v804_v15  ;;  %v809_v21 = vsub.f32 1.0, %v804_v15  ;;  %v815_v43 = vmul.f32 %v804_v15, %v723_v23  ;;  %v1015_v23 = vld [vmem:[#allocation5 + $0x50] sm:$0xff]  ;;  %v1546_v15 = vmov 0  }
 0xa27   :  { %1450 = vset.pattern.permute.xlu0 %v1546_v15  ;;  %1451 = vset.pattern.permute.xlu1 %v1546_v15 }
 0xa28   :  { %v807_v19 = vadd.f32 %v806_v18, %v223_v17 }
 0xa2a   :  { %1474 = vtanh.f32 %v807_v19 }
 0xa37   :  { %v1475_v20 = vpop.eup %1474 }
 0xa38   :  { %811 = vrot.lane.b32.xlu0 %v1475_v20, %s1545_s4 }
 0xaaa   :  { %v812_v22 = vpop.permute.xlu0 %811 }
 0xaab   :  { %v814_v44 = vmul.f32 %v812_v22, %v809_v21  ;;  %v1004_v22 = vld [vmem:[%s2023_s6] sm:$0x3] }
 0xaad   :  { %v816_v26 = vadd.f32 %v815_v43, %v814_v44 }
 0xaaf   :  { %818 = vrot.lane.b32.xlu1 %v816_v26, %s1545_s4 }
 0xb21   :  { %v819_v29 = vpop.permute.xlu1 %818 }
 0xb22   :  { %1433 = vmatmul.mubr.msk.f32.vlgmr.msra.gmra.mxu0 %vm254_vm2, %v819_v29 }
 0xb23   :  { %1123 = vmatprep.mubr.f32.mxu0 %v1544_v1  ;;  %1076 = vmatpush1.msra.mxu0 %v1019_v27 }
 0xb24   :  { %1077 = vmatprep.subr.mxu0 %v1018_v48 }
 0xb25   :  { %1078 = vmatpush1.msra.mxu0 %v1017_v12 }
 0xb26   :  { %1079 = vmatprep.subr.mxu0 %v1016_v14 }
 0xb27   :  { %1080 = vmatpush1.msra.mxu0 %v1015_v23 }
 0xbe2   :  { %v888_v30 = vpop.f32.mrf.mxu0 }
 0xbe3   :  { %v893_v31 = vadd.f32 %v888_v30, %v227_v45 }
 0xbe4   :  { %v890_v36 = vpop.f32.mrf.mxu0 }
 0xbe5   :  { %v894_v32 = vmul.f32 0.5, %v893_v31  ;;  %v898_v50 = vadd.f32 %v1735_v35, %v890_v36  ;;  %v1965_v36 = vld [vmem:[%s2025_s8] ss:$0 sm:$0xff] }
 0xbe7   :  { %1476 = vtanh.f32 %v894_v32 }
 0xbf4   :  { %v1477_v34 = vpop.eup %1476 }
 0xbf5   :  { %v896_v38 = vmul.f32 0.5, %v1477_v34 }
 0xbf7   :  { %v897_v39 = vadd.f32 0.5, %v896_v38 }
 0xbf9   :  { %v899_v40 = vmul.f32 %v898_v50, %v897_v39  ;;  %v902_v46 = vsub.f32 1.0, %v897_v39  ;;  %v908_v54 = vmul.f32 %v897_v39, %v816_v26  ;;  %v1956_v26 = vrot.slane %v1004_v22, %v1721_v25 }
 0xbfa   :  { %v1968_v39 = vrot.slane %v1004_v22, %v1730_v33 }
 0xbfb   :  { %v900_v51 = vadd.f32 %v899_v40, %v229_v2 }
 0xbfd   :  { %1478 = vtanh.f32 %v900_v51 }
 0xc0a   :  { %v1479_v52 = vpop.eup %1478 }
 0xc0b   :  { %904 = vrot.lane.b32.xlu0 %v1479_v52, %s1545_s4 }
 0xc7d   :  { %v905_v53 = vpop.permute.xlu0 %904 }
 0xc7e   :  { %v907_v41 = vmul.f32 %v905_v53, %v902_v46 }
 0xc80   :  { %v1923_v55 = vadd.f32 %v908_v54, %v907_v41  ;;  %v1437_v54 = vld [vmem:[%s2026_s9] ss:$0 sm:$0xff]  ;;  %s1547_s9 = smov 1  }
 0xc82   :  { %911 = vrot.lane.b32.xlu1 %v1923_v55, %s1545_s4 }
 0xcf4   :  { %v912_v56 = vpop.permute.xlu1 %911 }
 0xcf5   :  { %1434 = vmatmul.mubr.msk.f32.vlgmr.msra.gmra.mxu1 %vm254_vm2, %v912_v56 }
 0xcf6   :  { %1254 = vmatprep.mubr.f32.mxu1 %v1544_v1  ;;  %1207 = vmatpush1.msra.mxu1 %v1019_v27 }
 0xcf7   :  { %1208 = vmatprep.subr.mxu1 %v1018_v48 }
 0xcf8   :  { %1209 = vmatpush1.msra.mxu1 %v1017_v12 }
 0xcf9   :  { %1210 = vmatprep.subr.mxu1 %v1016_v14 }
 0xcfa   :  { %1211 = vmatpush1.msra.mxu1 %v1015_v23 }
 0xdb5   :  { %v981_v57 = vpop.f32.mrf.mxu1 }
 0xdb6   :  { %v986_v58 = vadd.f32 %v981_v57, %v233_v47 }
 0xdb7   :  { %v983_v61 = vpop.f32.mrf.mxu1 }
 0xdb8   :  { %v987_v59 = vmul.f32 0.5, %v986_v58  ;;  %v991_v0 = vadd.f32 %v1735_v35, %v983_v61  ;;  %v1014_v35 = vld [vmem:[#allocation5 + $0x48] sm:$0xff] }
 0xdb9   :  { %1081 = vmatprep.subr.mxu0 %v1014_v35  ;;  %1212 = vmatprep.subr.mxu1 %v1014_v35 }
 0xdba   :  { %1480 = vtanh.f32 %v987_v59  ;;  %1082 = vmatpush1.msra.mxu0 %v1013_v37  ;;  %1213 = vmatpush1.msra.mxu1 %v1013_v37 }
 0xdbb   :  { %1083 = vmatprep.subr.mxu0 %v1012_v49  ;;  %1214 = vmatprep.subr.mxu1 %v1012_v49 }
 0xdbc   :  { %1084 = vmatpush1.msra.mxu0 %v1011_v24  ;;  %1215 = vmatpush1.msra.mxu1 %v1011_v24 }
 0xdbd   :  { %1085 = vmatprep.subr.mxu0 %v1010_v4  ;;  %1216 = vmatprep.subr.mxu1 %v1010_v4 }
 0xdbe   :  { %1086 = vmatpush1.msra.mxu0 %v1009_v5  ;;  %1217 = vmatpush1.msra.mxu1 %v1009_v5 }
 0xdbf   :  { %1087 = vmatprep.subr.mxu0 %v1008_v6  ;;  %1218 = vmatprep.subr.mxu1 %v1008_v6 }
 0xdc0   :  { %1088 = vmatpush1.msra.mxu0 %v1007_v8  ;;  %1219 = vmatpush1.msra.mxu1 %v1007_v8 }
 0xdc1   :  { %1089 = vmatprep.subr.mxu0 %v1006_v10  ;;  %1220 = vmatprep.subr.mxu1 %v1006_v10 }
 0xdc2   :  { %1090 = vmatpush1.msra.mxu0 %v1005_v13  ;;  %1221 = vmatpush1.msra.mxu1 %v1005_v13 }
 0xdc3   :  { %1317 = vmatprep.subr.mxu0 %v1020_v11 }
 0xdc7   :  { %v1481_v60 = vpop.eup %1480 }
 0xdc8   :  { %v989_v62 = vmul.f32 0.5, %v1481_v60 }
 0xdca   :  { %v1931_v63 = vadd.f32 0.5, %v989_v62  ;;  %v1985_v62 = vld [vmem:[#allocation2] ss:$0 sm:$0xff] }
 0xdcc   :  { %v992_v9 = vmul.f32 %v991_v0, %v1931_v63  ;;  %v995_v16 = vsub.f32 1.0, %v1931_v63  ;;  %v1001_v18 = vmul.f32 %v1931_v63, %v1923_v55 }
 0xdce   :  { %v993_v42 = vadd.f32 %v992_v9, %v235_v7 }
 0xdd0   :  { %1482 = vtanh.f32 %v993_v42 }
 0xddd   :  { %v1483_v3 = vpop.eup %1482 }
 0xdde   :  { %997 = vrot.lane.b32.xlu0 %v1483_v3, %s1545_s4 }
 0xde2   :  { %1025 = vperm.xlu0 %1450, %v1799_v28   ;;  %v1003_v28 = vld [vmem:[%s2022_s5] sm:$0x3] }
 0xde3   :  { %v1960_v32 = vrot.slane %v1003_v28, %v1730_v33 }
 0xe50   :  { %v998_v17 = vpop.permute.xlu0 %997 }
 0xe51   :  { %v1000_v19 = vmul.f32 %v998_v17, %v995_v16 }
 0xe53   :  { %v1002_v20 = vadd.f32 %v1001_v18, %v1000_v19 }
 0xe55   :  { %1055 = vrot.lane.b32.xlu1 %v1002_v20, %s1545_s4 }
 0xe5d   :  { %v1026_v43 = vpop.permute.xlu0 %1025 }
 0xec7   :  { %v1056_v21 = vpop.permute.xlu1 %1055 }
 0xec8   :  { %1435 = vmatmul.mubr.msk.f32.vlgmr.msra.gmra.mxu0 %vm254_vm2, %v1056_v21 }
 0xec9   :  { %1318 = vmatpush1.msra.mxu0 %v1019_v27  ;;  %1365 = vmatprep.mubr.f32.mxu0 %v1544_v1  ;;  %v1949_v1 = vrot.slane %v1003_v28, %v1721_v25  ;;  %v1040_v25 = vmul.f32 %v1960_v32, %v1026_v43 }
 0xeca   :  { %1319 = vmatprep.subr.mxu0 %v1018_v48 }
 0xecb   :  { %1320 = vmatpush1.msra.mxu0 %v1017_v12  ;;  %v1039_v44 = vmul.f32 %v1949_v1, %v1026_v43  ;;  %v1053_v51 = vadd.f32 %v1968_v39, %v1040_v25 }
 0xecc   :  { %1321 = vmatprep.subr.mxu0 %v1016_v14 }
 0xecd   :  { %1322 = vmatpush1.msra.mxu0 %v1015_v23  ;;  %v1052_v29 = vadd.f32 %v1956_v26, %v1039_v44 }
 0xece   :  { %1323 = vmatprep.subr.mxu0 %v1014_v35 }
 0xecf   :  { %1324 = vmatpush1.msra.mxu0 %v1013_v37 }
 0xed0   :  { %1325 = vmatprep.subr.mxu0 %v1012_v49 }
 0xed1   :  { %1326 = vmatpush1.msra.mxu0 %v1011_v24 }
 0xed2   :  { %1327 = vmatprep.subr.mxu0 %v1010_v4 }
 0xed3   :  { %1328 = vmatpush1.msra.mxu0 %v1009_v5 }
 0xed4   :  { %1329 = vmatprep.subr.mxu0 %v1008_v6 }
 0xed5   :  { %1330 = vmatpush1.msra.mxu0 %v1007_v8 }
 0xed6   :  { %1331 = vmatprep.subr.mxu0 %v1006_v10 }
 0xed7   :  { %1332 = vmatpush1.msra.mxu0 %v1005_v13 }
 0xf88   :  { %v1125_v45 = vpop.f32.mrf.mxu0 }
 0xf89   :  { %v1130_v30 = vadd.f32 %v1125_v45, %v1052_v29 }
 0xf8a   :  { %v1127_v38 = vpop.f32.mrf.mxu0 }
 0xf8b   :  { %v1131_v31 = vmul.f32 0.5, %v1130_v30  ;;  %v1141_v40 = vadd.f32 %v1965_v36, %v1127_v38 }
 0xf8d   :  { %1484 = vtanh.f32 %v1131_v31 }
 0xf9a   :  { %v1485_v34 = vpop.eup %1484 }
 0xf9b   :  { %v1133_v50 = vmul.f32 0.5, %v1485_v34 }
 0xf9d   :  { %v1134_v2 = vadd.f32 0.5, %v1133_v50 }
 0xf9f   :  { %v1142_v52 = vmul.f32 %v1141_v40, %v1134_v2  ;;  %v1145_v33 = vsub.f32 1.0, %v1134_v2  ;;  %v1151_v55 = vmul.f32 %v1134_v2, %v1002_v20 }
 0xfa1   :  { %v1143_v46 = vadd.f32 %v1142_v52, %v1053_v51 }
 0xfa3   :  { %1486 = vtanh.f32 %v1143_v46 }
 0xfb0   :  { %v1487_v53 = vpop.eup %1486 }
 0xfb1   :  { %1147 = vrot.lane.b32.xlu1 %v1487_v53, %s1545_s4 }
 0xfb5   :  { %1158 = vrot.lane.b32.xlu1 %v1437_v54, %s1545_s4 }
0x1023   :  { %v1148_v41 = vpop.permute.xlu1 %1147 }
0x1024   :  { %v1150_v56 = vmul.f32 %v1148_v41, %v1145_v33 }
0x1026   :  { %v1152_v47 = vadd.f32 %v1151_v55, %v1150_v56 }
0x1027   :  { %v1978_v57 = vpop.permute.xlu1 %1158 }
0x1028   :  { %v1161_v58 = vmul.f32 %v1978_v57, %v1152_v47  ;;  %1186 = vrot.lane.b32.xlu0 %v1152_v47, %s1545_s4 }
0x102a   :  { %1163 = vrot.lane.b32.xlu1 %v1161_v58, %s1545_s4 }
0x109a   :  { %v1187_v59 = vpop.permute.xlu0 %1186 }
0x109b   :  { %1439 = vmatmul.mubr.msk.f32.vlgmr.msra.gmra.mxu1 %vm254_vm2, %v1187_v59 }
0x109c   :  { %v1164_v60 = vpop.permute.xlu1 %1163 }
0x109d   :  { %v1166_v61 = vsel %vm254_vm2, %v1164_v60, 0.0 }
0x109e   :  { %1167 = vadd.xlane.f32.xlu0 %v1166_v61 }
0x1127   :  { %v1168_v63 = vpop.xlane.xlu0 %1167 }
0x1128   :  { %v1988_v0 = vadd.f32 %v1985_v62, %v1168_v63 }
0x112a   :  { %1178 = vperm.xlu1 %1451, %v1988_v0  }
0x115b   :  { %v1256_v11 = vpop.f32.mrf.mxu1 }
0x115d   :  { %v1258_v14 = vpop.f32.mrf.mxu1 }
0x115e   :  { %v1266_v37 = vadd.f32 %v1965_v36, %v1258_v14 }
0x11a5   :  { %v1179_v7 = vpop.permute.xlu1 %1178 }
0x11a6   :  { %v1181_v9 = vmul.f32 %v1179_v7, %v1949_v1  ;;  %v1182_v23 = vmul.f32 %v1179_v7, %v1960_v32 }
0x11a8   :  { %v1183_v42 = vadd.f32 %v1181_v9, %v1956_v26  ;;  %v1184_v24 = vadd.f32 %v1182_v23, %v1968_v39 }
0x11aa   :  { %v1261_v27 = vadd.f32 %v1256_v11, %v1183_v42 }
0x11ac   :  { %v1262_v48 = vmul.f32 0.5, %v1261_v27 }
0x11ae   :  { %1488 = vtanh.f32 %v1262_v48 }
0x11bb   :  { %v1489_v12 = vpop.eup %1488 }
0x11bc   :  { %v1264_v35 = vmul.f32 0.5, %v1489_v12 }
0x11be   :  { %v1265_v49 = vadd.f32 0.5, %v1264_v35 }
0x11c0   :  { %v1267_v3 = vmul.f32 %v1266_v37, %v1265_v49  ;;  %v1270_v6 = vsub.f32 1.0, %v1265_v49  ;;  %v1276_v10 = vmul.f32 %v1265_v49, %v1152_v47 }
0x11c2   :  { %v1268_v4 = vadd.f32 %v1267_v3, %v1184_v24 }
0x11c4   :  { %1490 = vtanh.f32 %v1268_v4 }
0x11d1   :  { %v1491_v5 = vpop.eup %1490 }
0x11d2   :  { %1272 = vrot.lane.b32.xlu1 %v1491_v5, %s1545_s4 }
0x1244   :  { %v1273_v8 = vpop.permute.xlu1 %1272 }
0x1245   :  { %v1275_v13 = vmul.f32 %v1273_v8, %v1270_v6 }
0x1247   :  { %v1277_v15 = vadd.f32 %v1276_v10, %v1275_v13 }
0x1249   :  { %1297 = vrot.lane.b32.xlu1 %v1277_v15, %s1545_s4  ;;  %v1278_v16 = vmul.f32 %v1277_v15, %v1978_v57 }
0x124d   :  { %1280 = vrot.lane.b32.xlu1 %v1278_v16, %s1545_s4 }
0x12bb   :  { %v1298_v17 = vpop.permute.xlu1 %1297 }
0x12bc   :  { %1440 = vmatmul.mubr.msk.f32.vlgmr.msra.gmra.mxu0 %vm254_vm2, %v1298_v17 }
0x12bf   :  { %v1281_v18 = vpop.permute.xlu1 %1280 }
0x12c0   :  { %v1283_v19 = vsel %vm254_vm2, %v1281_v18, 0.0 }
0x12c1   :  { %1284 = vadd.xlane.f32.xlu1 %v1283_v19 }
0x134a   :  { %v1285_v20 = vpop.xlane.xlu1 %1284 }
0x134b   :  { %v1286_v21 = vadd.f32 %v1985_v62, %v1285_v20 }
0x134d   :  { %1289 = vperm.xlu0 %1450, %v1286_v21  }
0x137c   :  { %v1367_v44 = vpop.f32.mrf.mxu0 }
0x137e   :  { %v1369_v31 = vpop.f32.mrf.mxu0 }
0x137f   :  { %v1377_v25 = vadd.f32 %v1965_v36, %v1369_v31 }
0x13c8   :  { %v1290_v28 = vpop.permute.xlu0 %1289 }
0x13c9   :  { %v1292_v22 = vmul.f32 %v1290_v28, %v1949_v1  ;;  %v1293_v34 = vmul.f32 %v1290_v28, %v1960_v32 }
0x13cb   :  { %v1294_v43 = vadd.f32 %v1292_v22, %v1956_v26  ;;  %v1295_v2 = vadd.f32 %v1293_v34, %v1968_v39 }
0x13cd   :  { %v1372_v29 = vadd.f32 %v1367_v44, %v1294_v43 }
0x13cf   :  { %v1373_v45 = vmul.f32 0.5, %v1372_v29 }
0x13d1   :  { %1492 = vtanh.f32 %v1373_v45 }
0x13de   :  { %v1493_v30 = vpop.eup %1492 }
0x13df   :  { %v1375_v38 = vmul.f32 0.5, %v1493_v30 }
0x13e1   :  { %v1376_v50 = vadd.f32 0.5, %v1375_v38 }
0x13e3   :  { %v1378_v40 = vmul.f32 %v1377_v25, %v1376_v50  ;;  %v1381_v26 = vsub.f32 1.0, %v1376_v50  ;;  %v1387_v46 = vmul.f32 %v1376_v50, %v1277_v15 }
0x13e5   :  { %v1379_v51 = vadd.f32 %v1378_v40, %v1295_v2 }
0x13e7   :  { %1494 = vtanh.f32 %v1379_v51 }
0x13f4   :  { %v1495_v1 = vpop.eup %1494 }
0x13f5   :  { %1383 = vrot.lane.b32.xlu1 %v1495_v1, %s1545_s4 }
0x13f9   :  { %1398 = vrot.lane.b32.xlu1 %v1286_v21, %s1547_s9 }
0x1467   :  { %v1384_v52 = vpop.permute.xlu1 %1383 }
0x1468   :  { %v1386_v53 = vmul.f32 %v1384_v52, %v1381_v26 }
0x146a   :  { %v1388_v54 = vadd.f32 %v1387_v46, %v1386_v53 }
0x146b   :  { %v1399_v55 = vpop.permute.xlu1 %1398 }
0x146c   :  { %v1389_v32 = vmul.f32 %v1388_v54, %v1978_v57  ;;  %v1406_v56 = vsel %vm1405_vm3, %v1988_v0, %v1399_v55 }
0x146e   :  { %1391 = vrot.lane.b32.xlu0 %v1389_v32, %s1545_s4 }
0x14e0   :  { %v1392_v36 = vpop.permute.xlu0 %1391 }
0x14e1   :  { %v1394_v39 = vsel %vm254_vm2, %v1392_v36, 0.0 }
0x14e2   :  { %1395 = vadd.xlane.f32.xlu0 %v1394_v39 }
0x156b   :  { %v1396_v33 = vpop.xlane.xlu0 %1395 }
0x156c   :  { %v1397_v41 = vadd.f32 %v1985_v62, %v1396_v33 }
0x156e   :  { %1402 = vrot.lane.b32.xlu1 %v1397_v41, %s1548_s17 }
0x15e0   :  { %v1403_v47 = vpop.permute.xlu1 %1402 }
0x15e1   :  { %v1408_v58 = vsel %vm1407_vm4, %v1406_v56, %v1403_v47 }
0x15e2   :  { %1410 = vst.msk [vmem:[%s2028_s11] sm:$0xff] %vm1409_vm5, %v1408_v58 }
0x15e3   :  { %1415 = vsyncpa [#allocation4], 1 }
0x15e4   :  { %1416 = vsyncpa [#allocation6], 1 }

</bundles_post_ra>
